<compile_context>
chip_gen: v5e
topology: v5e:2x2
jax: 0.10.0
libtpu: 0.0.40
codegen_flags: <defaults>
</compile_context>

<pallas_src>
import functools
import math

import jax
import jax.numpy as jnp
from jax.experimental import pallas as pl
from jax.experimental.pallas import tpu as pltpu

_BN_EPS = 1e-5
_LRELU_SLOPE = 0.1          # LeakyReLU(0.1) in the module
_KAIMING_A = 0.01


def _cdiv(a, b):
    return -(-a // b)


def _round_up(x, m):
    return ((x + m - 1) // m) * m


# ---------------------------------------------------------------------------
# Pallas kernel: one block of TP output-image rows.
#   a_ref    : (TP*W, Cin)        bf16  NHWC-flattened input pixels
#   b_ref    : (2, Cin, 2*Cout)   bf16  BN-scale-folded weights, cols = (kw, co)
#   shift_ref: (1, 2*Cout)        f32   folded BN shift, cols = (kw, co)
#   o_ref    : (TP, 2, W, 2*Cout) bf16  [row, kh, col, (kw, co)] depth-to-space
# Cin is consumed in a single block (no reduction axis); jnp.dot accumulates in
# f32 on the MXU.
# ---------------------------------------------------------------------------
def _up_rows_kernel(a_ref, b_ref, shift_ref, o_ref, *, rows, width, neg_slope):
    a = a_ref[...]
    shift = shift_ref[...]
    for kh in range(2):
        y = jnp.dot(a, b_ref[kh], preferred_element_type=jnp.float32)
        y = y + shift
        y = jnp.where(y >= 0.0, y, neg_slope * y)
        y = y.astype(o_ref.dtype)
        # Scatter the TP*W matmul rows into (row, kh, col, :) with static,
        # vreg-aligned slices + plain stores (no in-kernel relayout/reshape).
        for r in range(rows):
            o_ref[r, kh, :, :] = y[r * width:(r + 1) * width, :]


def _pick_row_tile(p, width, cin, nc, *, vmem_budget=24 * 1024 * 1024,
                   tm_cap=2048, tp_cap=128):
    """Rows-of-pixels per grid block (TP).  TM = TP * width matmul rows."""
    cin_pad = _round_up(cin, 128)
    nc_pad = _round_up(nc, 128)
    # Resident (double-buffered) weights come off the top of the budget.
    budget = max(vmem_budget - 2 * 2 * cin * nc_pad * 2, 2 * 1024 * 1024)
    # Per output-image-row bytes: A block + out block, bf16, double-buffered.
    bytes_per_row = 2 * (width * cin_pad * 2) + 2 * (2 * width * nc_pad * 2)
    tp = max(1, min(p, tp_cap, max(1, tm_cap // width),
                    max(1, budget // bytes_per_row)))
    # v7x has 2 TensorCores sharing the "parallel" grid: keep >= 2 blocks.
    if _cdiv(p, tp) < 2 and p >= 2:
        tp = _cdiv(p, 2)
    if tp >= p:
        return p
    # Keep the A block's sublane extent (TP*W) a multiple of 16 (bf16 packing);
    # a full-array block is always legal, so fall back to that if needed.
    align = 16 // math.gcd(width, 16)
    tp = _round_up(tp, align)
    return p if tp >= p else tp


# ---------------------------------------------------------------------------
# `up.forward`: ConvTranspose2d(k=2, s=2, bias=False) -> BatchNorm2d -> LeakyReLU
# ---------------------------------------------------------------------------
def up_forward(params, x_nchw):
    w = params['weight']                                   # (Cin, Cout, 2, 2)
    cin, cout = w.shape[0], w.shape[1]
    n, _, h, wd = x_nchw.shape
    nc = 2 * cout                                          # (kw, co) columns
    p = n * h                                              # input image rows

    # Fold eval-mode BatchNorm into a per-output-channel affine; the scale is
    # folded into the weights (in f32, before the bf16 cast) so the kernel
    # epilogue is just `+ shift` and the leaky-relu.
    # TODO(synk): BatchNorm train-mode batch statistics / running-stat updates
    # are not reproduced (eval-mode semantics only).
    scale_c = params['gamma'] / jnp.sqrt(params['running_var'] + _BN_EPS)
    shift_c = params['beta'] - params['running_mean'] * scale_c

    # Per-kh weight slabs: B[kh] has shape (Cin, 2*Cout), columns (kw, co).
    b = jnp.transpose(w, (2, 0, 3, 1)).reshape(2, cin, nc)
    b = (b * jnp.tile(scale_c, 2)[None, None, :]).astype(jnp.bfloat16)
    shift = jnp.tile(shift_c, 2).reshape(1, nc).astype(jnp.float32)

    # bf16 cast BEFORE the NCHW->NHWC transpose (halves the transpose bytes).
    a = jnp.transpose(x_nchw.astype(jnp.bfloat16), (0, 2, 3, 1))
    a = a.reshape(n * h * wd, cin)

    tp = _pick_row_tile(p, wd, cin, nc)
    tm = tp * wd
    grid = (_cdiv(p, tp),)

    # TODO(synk): Cin is consumed in a single block; for Cin beyond a few
    # thousand a K-reduction grid axis + f32 accumulator scratch would be needed.

    kernel = functools.partial(_up_rows_kernel, rows=tp, width=wd,
                               neg_slope=_LRELU_SLOPE)
    cost = pl.CostEstimate(
        flops=4 * (n * h * wd) * cin * nc,
        transcendentals=0,
        bytes_accessed=(a.size * 2 + b.size * 2 + shift.size * 4
                        + p * 2 * wd * nc * 2),
    )

    out = pl.pallas_call(
        kernel,
        out_shape=jax.ShapeDtypeStruct((p, 2, wd, nc), jnp.bfloat16),
        grid_spec=pltpu.PrefetchScalarGridSpec(
            num_scalar_prefetch=0,
            grid=grid,
            in_specs=[
                pl.BlockSpec((tm, cin), lambda i: (i, 0)),
                pl.BlockSpec((2, cin, nc), lambda i: (0, 0, 0)),   # resident weights
                pl.BlockSpec((1, nc), lambda i: (0, 0)),           # resident shift
            ],
            out_specs=pl.BlockSpec((tp, 2, wd, nc), lambda i: (i, 0, 0, 0)),
        ),
        compiler_params=pltpu.CompilerParams(
            dimension_semantics=("parallel",),
            vmem_limit_bytes=40 * 1024 * 1024,
        ),
        cost_estimate=cost,
    )(a, b, shift)

    # (N*H, 2, W, 2, Cout) row-major IS NHWC depth-to-space: zero-copy collapse.
    y_nhwc = out.reshape(n, 2 * h, 2 * wd, cout)
    # Single remaining big-tensor pass: NHWC -> NCHW, fused with the f32 upcast.
    # (Drop this transpose entirely if the consumer can take NHWC / bf16.)
    return jnp.transpose(y_nhwc, (0, 3, 1, 2)).astype(jnp.float32)


# ---------------------------------------------------------------------------
# Pure-JAX f32 reference (for correctness check only)
# ---------------------------------------------------------------------------
def up_reference(x, w, gamma, beta, mean, var, eps=_BN_EPS, slope=_LRELU_SLOPE):
    y = jnp.einsum('ncij,cokl->noikjl', x, w)              # (N, Cout, H, 2, W, 2)
    n, co, h, _, wd, _ = y.shape
    y = y.reshape(n, co, 2 * h, 2 * wd)
    scale = gamma / jnp.sqrt(var + eps)
    shift = beta - mean * scale
    y = y * scale[None, :, None, None] + shift[None, :, None, None]
    return jnp.where(y >= 0, y, slope * y)


# ---------------------------------------------------------------------------
if __name__ == "__main__":
    key = jax.random.PRNGKey(0)
    wkey, xkey = jax.random.split(key)

    N, CIN, H, W = 2, 64, 16, 16
    COUT = 32

    # ConvTranspose2d weight, PyTorch layout (Cin, Cout, 2, 2); Kaiming-like init.
    fan_in = COUT * 2 * 2
    std = math.sqrt(2.0 / ((1.0 + _KAIMING_A ** 2) * fan_in))
    weight = jax.random.normal(wkey, (CIN, COUT, 2, 2), jnp.float32) * std

    # BatchNorm2d parameters (fresh-module defaults; eval-mode running stats).
    params = {
        'weight': weight,
        'gamma': jnp.ones((COUT,), jnp.float32),
        'beta': jnp.zeros((COUT,), jnp.float32),
        'running_mean': jnp.zeros((COUT,), jnp.float32),
        'running_var': jnp.ones((COUT,), jnp.float32),
    }

    x = jax.random.normal(xkey, (N, CIN, H, W), jnp.float32)

    out = jax.jit(up_forward)(params, x)
    jax.block_until_ready(out)

    assert out.shape == (N, COUT, 2 * H, 2 * W), out.shape
    assert out.dtype == jnp.float32
    assert bool(jnp.all(jnp.isfinite(out)))

    ref = up_reference(x, weight, params['gamma'], params['beta'],
                       params['running_mean'], params['running_var'])
    max_err = float(jnp.max(jnp.abs(out - ref)))
    assert max_err < 5e-2, f"max abs err vs f32 reference: {max_err}"

    print("KERNEL_OK")
</pallas_src>

<mosaic_0001>
module attributes {stable_mosaic.version = 11 : i64} {
  func.func @_up_rows_kernel(%arg0: i32, %arg1: memref<256x64xbf16, #tpu.memory_space<vmem>>, %arg2: memref<2x64x64xbf16, #tpu.memory_space<vmem>>, %arg3: memref<1x64xf32, #tpu.memory_space<vmem>>, %arg4: memref<16x2x16x64xbf16, #tpu.memory_space<vmem>>) attributes {dimension_semantics = [#tpu.dimension_semantics<parallel>], iteration_bounds = array<i64: 2>, scalar_prefetch = 0 : i64, scratch_operands = 0 : i64, tpu.core_type = #tpu.core_type<tc>, window_params = [{transform_indices = @transform_0, window_bounds = array<i64: 256, 64>}, {pipeline_mode = #tpu.pipeline_mode<synchronous>, transform_indices = @transform_1, window_bounds = array<i64: 2, 64, 64>}, {pipeline_mode = #tpu.pipeline_mode<synchronous>, transform_indices = @transform_2, window_bounds = array<i64: 1, 64>}, {transform_indices = @transform_3, window_bounds = array<i64: 16, 2, 16, 64>}]} {
    %c0 = arith.constant 0 : index
    %c0_0 = arith.constant 0 : index
    %0 = vector.load %arg1[%c0, %c0_0] : memref<256x64xbf16, #tpu.memory_space<vmem>>, vector<256x64xbf16>
    %c0_1 = arith.constant 0 : index
    %c0_2 = arith.constant 0 : index
    %1 = vector.load %arg3[%c0_1, %c0_2] : memref<1x64xf32, #tpu.memory_space<vmem>>, vector<1x64xf32>
    %c0_3 = arith.constant 0 : index
    %c0_4 = arith.constant 0 : index
    %c0_5 = arith.constant 0 : index
    %2 = vector.load %arg2[%c0_3, %c0_4, %c0_5] : memref<2x64x64xbf16, #tpu.memory_space<vmem>>, vector<1x64x64xbf16>
    %3 = vector.shape_cast %2 : vector<1x64x64xbf16> to vector<64x64xbf16>
    %cst = arith.constant dense<0.000000e+00> : vector<256x64xf32>
    %4 = tpu.matmul %0, %3, %cst {dimension_numbers = #tpu.dot_dimension_numbers<[1], [0], [0], [1], [0, 0, 1, 1], [], []>} : vector<256x64xbf16>, vector<64x64xbf16>, vector<256x64xf32> -> vector<256x64xf32>
    %5 = vector.broadcast %1 : vector<1x64xf32> to vector<256x64xf32>
    %6 = arith.addf %4, %5 : vector<256x64xf32>
    %cst_6 = arith.constant 0.000000e+00 : f32
    %7 = vector.broadcast %cst_6 : f32 to vector<256x64xf32>
    %8 = arith.cmpf oge, %6, %7 : vector<256x64xf32>
    %cst_7 = arith.constant 1.000000e-01 : f32
    %9 = vector.broadcast %cst_7 : f32 to vector<256x64xf32>
    %10 = arith.mulf %9, %6 : vector<256x64xf32>
    %11 = arith.select %8, %6, %10 : vector<256x64xi1>, vector<256x64xf32>
    %12 = arith.truncf %11 : vector<256x64xf32> to vector<256x64xbf16>
    %13 = vector.extract_strided_slice %12 {offsets = [0, 0], sizes = [16, 64], strides = [1, 1]} : vector<256x64xbf16> to vector<16x64xbf16>
    %c0_8 = arith.constant 0 : index
    %c0_9 = arith.constant 0 : index
    %c0_10 = arith.constant 0 : index
    %c0_11 = arith.constant 0 : index
    %14 = vector.load %arg4[%c0_8, %c0_9, %c0_10, %c0_11] : memref<16x2x16x64xbf16, #tpu.memory_space<vmem>>, vector<1x1x16x64xbf16>
    %15 = vector.shape_cast %14 : vector<1x1x16x64xbf16> to vector<16x64xbf16>
    %16 = vector.shape_cast %13 : vector<16x64xbf16> to vector<1x1x16x64xbf16>
    tpu.vector_store %arg4[%c0_8, %c0_9, %c0_10, %c0_11], %16 {strides = array<i32>} : memref<16x2x16x64xbf16, #tpu.memory_space<vmem>>, vector<1x1x16x64xbf16>,
    %17 = vector.extract_strided_slice %12 {offsets = [16, 0], sizes = [16, 64], strides = [1, 1]} : vector<256x64xbf16> to vector<16x64xbf16>
    %c1 = arith.constant 1 : index
    %c0_12 = arith.constant 0 : index
    %c0_13 = arith.constant 0 : index
    %c0_14 = arith.constant 0 : index
    %18 = vector.load %arg4[%c1, %c0_12, %c0_13, %c0_14] : memref<16x2x16x64xbf16, #tpu.memory_space<vmem>>, vector<1x1x16x64xbf16>
    %19 = vector.shape_cast %18 : vector<1x1x16x64xbf16> to vector<16x64xbf16>
    %20 = vector.shape_cast %17 : vector<16x64xbf16> to vector<1x1x16x64xbf16>
    tpu.vector_store %arg4[%c1, %c0_12, %c0_13, %c0_14], %20 {strides = array<i32>} : memref<16x2x16x64xbf16, #tpu.memory_space<vmem>>, vector<1x1x16x64xbf16>,
    %21 = vector.extract_strided_slice %12 {offsets = [32, 0], sizes = [16, 64], strides = [1, 1]} : vector<256x64xbf16> to vector<16x64xbf16>
    %c2 = arith.constant 2 : index
    %c0_15 = arith.constant 0 : index
    %c0_16 = arith.constant 0 : index
    %c0_17 = arith.constant 0 : index
    %22 = vector.load %arg4[%c2, %c0_15, %c0_16, %c0_17] : memref<16x2x16x64xbf16, #tpu.memory_space<vmem>>, vector<1x1x16x64xbf16>
    %23 = vector.shape_cast %22 : vector<1x1x16x64xbf16> to vector<16x64xbf16>
    %24 = vector.shape_cast %21 : vector<16x64xbf16> to vector<1x1x16x64xbf16>
    tpu.vector_store %arg4[%c2, %c0_15, %c0_16, %c0_17], %24 {strides = array<i32>} : memref<16x2x16x64xbf16, #tpu.memory_space<vmem>>, vector<1x1x16x64xbf16>,
    %25 = vector.extract_strided_slice %12 {offsets = [48, 0], sizes = [16, 64], strides = [1, 1]} : vector<256x64xbf16> to vector<16x64xbf16>
    %c3 = arith.constant 3 : index
    %c0_18 = arith.constant 0 : index
    %c0_19 = arith.constant 0 : index
    %c0_20 = arith.constant 0 : index
    %26 = vector.load %arg4[%c3, %c0_18, %c0_19, %c0_20] : memref<16x2x16x64xbf16, #tpu.memory_space<vmem>>, vector<1x1x16x64xbf16>
    %27 = vector.shape_cast %26 : vector<1x1x16x64xbf16> to vector<16x64xbf16>
    %28 = vector.shape_cast %25 : vector<16x64xbf16> to vector<1x1x16x64xbf16>
    tpu.vector_store %arg4[%c3, %c0_18, %c0_19, %c0_20], %28 {strides = array<i32>} : memref<16x2x16x64xbf16, #tpu.memory_space<vmem>>, vector<1x1x16x64xbf16>,
    %29 = vector.extract_strided_slice %12 {offsets = [64, 0], sizes = [16, 64], strides = [1, 1]} : vector<256x64xbf16> to vector<16x64xbf16>
    %c4 = arith.constant 4 : index
    %c0_21 = arith.constant 0 : index
    %c0_22 = arith.constant 0 : index
    %c0_23 = arith.constant 0 : index
    %30 = vector.load %arg4[%c4, %c0_21, %c0_22, %c0_23] : memref<16x2x16x64xbf16, #tpu.memory_space<vmem>>, vector<1x1x16x64xbf16>
    %31 = vector.shape_cast %30 : vector<1x1x16x64xbf16> to vector<16x64xbf16>
    %32 = vector.shape_cast %29 : vector<16x64xbf16> to vector<1x1x16x64xbf16>
    tpu.vector_store %arg4[%c4, %c0_21, %c0_22, %c0_23], %32 {strides = array<i32>} : memref<16x2x16x64xbf16, #tpu.memory_space<vmem>>, vector<1x1x16x64xbf16>,
    %33 = vector.extract_strided_slice %12 {offsets = [80, 0], sizes = [16, 64], strides = [1, 1]} : vector<256x64xbf16> to vector<16x64xbf16>
    %c5 = arith.constant 5 : index
    %c0_24 = arith.constant 0 : index
    %c0_25 = arith.constant 0 : index
    %c0_26 = arith.constant 0 : index
    %34 = vector.load %arg4[%c5, %c0_24, %c0_25, %c0_26] : memref<16x2x16x64xbf16, #tpu.memory_space<vmem>>, vector<1x1x16x64xbf16>
    %35 = vector.shape_cast %34 : vector<1x1x16x64xbf16> to vector<16x64xbf16>
    %36 = vector.shape_cast %33 : vector<16x64xbf16> to vector<1x1x16x64xbf16>
    tpu.vector_store %arg4[%c5, %c0_24, %c0_25, %c0_26], %36 {strides = array<i32>} : memref<16x2x16x64xbf16, #tpu.memory_space<vmem>>, vector<1x1x16x64xbf16>,
    %37 = vector.extract_strided_slice %12 {offsets = [96, 0], sizes = [16, 64], strides = [1, 1]} : vector<256x64xbf16> to vector<16x64xbf16>
    %c6 = arith.constant 6 : index
    %c0_27 = arith.constant 0 : index
    %c0_28 = arith.constant 0 : index
    %c0_29 = arith.constant 0 : index
    %38 = vector.load %arg4[%c6, %c0_27, %c0_28, %c0_29] : memref<16x2x16x64xbf16, #tpu.memory_space<vmem>>, vector<1x1x16x64xbf16>
    %39 = vector.shape_cast %38 : vector<1x1x16x64xbf16> to vector<16x64xbf16>
    %40 = vector.shape_cast %37 : vector<16x64xbf16> to vector<1x1x16x64xbf16>
    tpu.vector_store %arg4[%c6, %c0_27, %c0_28, %c0_29], %40 {strides = array<i32>} : memref<16x2x16x64xbf16, #tpu.memory_space<vmem>>, vector<1x1x16x64xbf16>,
    %41 = vector.extract_strided_slice %12 {offsets = [112, 0], sizes = [16, 64], strides = [1, 1]} : vector<256x64xbf16> to vector<16x64xbf16>
    %c7 = arith.constant 7 : index
    %c0_30 = arith.constant 0 : index
    %c0_31 = arith.constant 0 : index
    %c0_32 = arith.constant 0 : index
    %42 = vector.load %arg4[%c7, %c0_30, %c0_31, %c0_32] : memref<16x2x16x64xbf16, #tpu.memory_space<vmem>>, vector<1x1x16x64xbf16>
    %43 = vector.shape_cast %42 : vector<1x1x16x64xbf16> to vector<16x64xbf16>
    %44 = vector.shape_cast %41 : vector<16x64xbf16> to vector<1x1x16x64xbf16>
    tpu.vector_store %arg4[%c7, %c0_30, %c0_31, %c0_32], %44 {strides = array<i32>} : memref<16x2x16x64xbf16, #tpu.memory_space<vmem>>, vector<1x1x16x64xbf16>,
    %45 = vector.extract_strided_slice %12 {offsets = [128, 0], sizes = [16, 64], strides = [1, 1]} : vector<256x64xbf16> to vector<16x64xbf16>
    %c8 = arith.constant 8 : index
    %c0_33 = arith.constant 0 : index
    %c0_34 = arith.constant 0 : index
    %c0_35 = arith.constant 0 : index
    %46 = vector.load %arg4[%c8, %c0_33, %c0_34, %c0_35] : memref<16x2x16x64xbf16, #tpu.memory_space<vmem>>, vector<1x1x16x64xbf16>
    %47 = vector.shape_cast %46 : vector<1x1x16x64xbf16> to vector<16x64xbf16>
    %48 = vector.shape_cast %45 : vector<16x64xbf16> to vector<1x1x16x64xbf16>
    tpu.vector_store %arg4[%c8, %c0_33, %c0_34, %c0_35], %48 {strides = array<i32>} : memref<16x2x16x64xbf16, #tpu.memory_space<vmem>>, vector<1x1x16x64xbf16>,
    %49 = vector.extract_strided_slice %12 {offsets = [144, 0], sizes = [16, 64], strides = [1, 1]} : vector<256x64xbf16> to vector<16x64xbf16>
    %c9 = arith.constant 9 : index
    %c0_36 = arith.constant 0 : index
    %c0_37 = arith.constant 0 : index
    %c0_38 = arith.constant 0 : index
    %50 = vector.load %arg4[%c9, %c0_36, %c0_37, %c0_38] : memref<16x2x16x64xbf16, #tpu.memory_space<vmem>>, vector<1x1x16x64xbf16>
    %51 = vector.shape_cast %50 : vector<1x1x16x64xbf16> to vector<16x64xbf16>
    %52 = vector.shape_cast %49 : vector<16x64xbf16> to vector<1x1x16x64xbf16>
    tpu.vector_store %arg4[%c9, %c0_36, %c0_37, %c0_38], %52 {strides = array<i32>} : memref<16x2x16x64xbf16, #tpu.memory_space<vmem>>, vector<1x1x16x64xbf16>,
    %53 = vector.extract_strided_slice %12 {offsets = [160, 0], sizes = [16, 64], strides = [1, 1]} : vector<256x64xbf16> to vector<16x64xbf16>
    %c10 = arith.constant 10 : index
    %c0_39 = arith.constant 0 : index
    %c0_40 = arith.constant 0 : index
    %c0_41 = arith.constant 0 : index
    %54 = vector.load %arg4[%c10, %c0_39, %c0_40, %c0_41] : memref<16x2x16x64xbf16, #tpu.memory_space<vmem>>, vector<1x1x16x64xbf16>
    %55 = vector.shape_cast %54 : vector<1x1x16x64xbf16> to vector<16x64xbf16>
    %56 = vector.shape_cast %53 : vector<16x64xbf16> to vector<1x1x16x64xbf16>
    tpu.vector_store %arg4[%c10, %c0_39, %c0_40, %c0_41], %56 {strides = array<i32>} : memref<16x2x16x64xbf16, #tpu.memory_space<vmem>>, vector<1x1x16x64xbf16>,
    %57 = vector.extract_strided_slice %12 {offsets = [176, 0], sizes = [16, 64], strides = [1, 1]} : vector<256x64xbf16> to vector<16x64xbf16>
    %c11 = arith.constant 11 : index
    %c0_42 = arith.constant 0 : index
    %c0_43 = arith.constant 0 : index
    %c0_44 = arith.constant 0 : index
    %58 = vector.load %arg4[%c11, %c0_42, %c0_43, %c0_44] : memref<16x2x16x64xbf16, #tpu.memory_space<vmem>>, vector<1x1x16x64xbf16>
    %59 = vector.shape_cast %58 : vector<1x1x16x64xbf16> to vector<16x64xbf16>
    %60 = vector.shape_cast %57 : vector<16x64xbf16> to vector<1x1x16x64xbf16>
    tpu.vector_store %arg4[%c11, %c0_42, %c0_43, %c0_44], %60 {strides = array<i32>} : memref<16x2x16x64xbf16, #tpu.memory_space<vmem>>, vector<1x1x16x64xbf16>,
    %61 = vector.extract_strided_slice %12 {offsets = [192, 0], sizes = [16, 64], strides = [1, 1]} : vector<256x64xbf16> to vector<16x64xbf16>
    %c12 = arith.constant 12 : index
    %c0_45 = arith.constant 0 : index
    %c0_46 = arith.constant 0 : index
    %c0_47 = arith.constant 0 : index
    %62 = vector.load %arg4[%c12, %c0_45, %c0_46, %c0_47] : memref<16x2x16x64xbf16, #tpu.memory_space<vmem>>, vector<1x1x16x64xbf16>
    %63 = vector.shape_cast %62 : vector<1x1x16x64xbf16> to vector<16x64xbf16>
    %64 = vector.shape_cast %61 : vector<16x64xbf16> to vector<1x1x16x64xbf16>
    tpu.vector_store %arg4[%c12, %c0_45, %c0_46, %c0_47], %64 {strides = array<i32>} : memref<16x2x16x64xbf16, #tpu.memory_space<vmem>>, vector<1x1x16x64xbf16>,
    %65 = vector.extract_strided_slice %12 {offsets = [208, 0], sizes = [16, 64], strides = [1, 1]} : vector<256x64xbf16> to vector<16x64xbf16>
    %c13 = arith.constant 13 : index
    %c0_48 = arith.constant 0 : index
    %c0_49 = arith.constant 0 : index
    %c0_50 = arith.constant 0 : index
    %66 = vector.load %arg4[%c13, %c0_48, %c0_49, %c0_50] : memref<16x2x16x64xbf16, #tpu.memory_space<vmem>>, vector<1x1x16x64xbf16>
    %67 = vector.shape_cast %66 : vector<1x1x16x64xbf16> to vector<16x64xbf16>
    %68 = vector.shape_cast %65 : vector<16x64xbf16> to vector<1x1x16x64xbf16>
    tpu.vector_store %arg4[%c13, %c0_48, %c0_49, %c0_50], %68 {strides = array<i32>} : memref<16x2x16x64xbf16, #tpu.memory_space<vmem>>, vector<1x1x16x64xbf16>,
    %69 = vector.extract_strided_slice %12 {offsets = [224, 0], sizes = [16, 64], strides = [1, 1]} : vector<256x64xbf16> to vector<16x64xbf16>
    %c14 = arith.constant 14 : index
    %c0_51 = arith.constant 0 : index
    %c0_52 = arith.constant 0 : index
    %c0_53 = arith.constant 0 : index
    %70 = vector.load %arg4[%c14, %c0_51, %c0_52, %c0_53] : memref<16x2x16x64xbf16, #tpu.memory_space<vmem>>, vector<1x1x16x64xbf16>
    %71 = vector.shape_cast %70 : vector<1x1x16x64xbf16> to vector<16x64xbf16>
    %72 = vector.shape_cast %69 : vector<16x64xbf16> to vector<1x1x16x64xbf16>
    tpu.vector_store %arg4[%c14, %c0_51, %c0_52, %c0_53], %72 {strides = array<i32>} : memref<16x2x16x64xbf16, #tpu.memory_space<vmem>>, vector<1x1x16x64xbf16>,
    %73 = vector.extract_strided_slice %12 {offsets = [240, 0], sizes = [16, 64], strides = [1, 1]} : vector<256x64xbf16> to vector<16x64xbf16>
    %c15 = arith.constant 15 : index
    %c0_54 = arith.constant 0 : index
    %c0_55 = arith.constant 0 : index
    %c0_56 = arith.constant 0 : index
    %74 = vector.load %arg4[%c15, %c0_54, %c0_55, %c0_56] : memref<16x2x16x64xbf16, #tpu.memory_space<vmem>>, vector<1x1x16x64xbf16>
    %75 = vector.shape_cast %74 : vector<1x1x16x64xbf16> to vector<16x64xbf16>
    %76 = vector.shape_cast %73 : vector<16x64xbf16> to vector<1x1x16x64xbf16>
    tpu.vector_store %arg4[%c15, %c0_54, %c0_55, %c0_56], %76 {strides = array<i32>} : memref<16x2x16x64xbf16, #tpu.memory_space<vmem>>, vector<1x1x16x64xbf16>,
    %c1_57 = arith.constant 1 : index
    %c0_58 = arith.constant 0 : index
    %c0_59 = arith.constant 0 : index
    %77 = vector.load %arg2[%c1_57, %c0_58, %c0_59] : memref<2x64x64xbf16, #tpu.memory_space<vmem>>, vector<1x64x64xbf16>
    %78 = vector.shape_cast %77 : vector<1x64x64xbf16> to vector<64x64xbf16>
    %cst_60 = arith.constant dense<0.000000e+00> : vector<256x64xf32>
    %79 = tpu.matmul %0, %78, %cst_60 {dimension_numbers = #tpu.dot_dimension_numbers<[1], [0], [0], [1], [0, 0, 1, 1], [], []>} : vector<256x64xbf16>, vector<64x64xbf16>, vector<256x64xf32> -> vector<256x64xf32>
    %80 = vector.broadcast %1 : vector<1x64xf32> to vector<256x64xf32>
    %81 = arith.addf %79, %80 : vector<256x64xf32>
    %cst_61 = arith.constant 0.000000e+00 : f32
    %82 = vector.broadcast %cst_61 : f32 to vector<256x64xf32>
    %83 = arith.cmpf oge, %81, %82 : vector<256x64xf32>
    %cst_62 = arith.constant 1.000000e-01 : f32
    %84 = vector.broadcast %cst_62 : f32 to vector<256x64xf32>
    %85 = arith.mulf %84, %81 : vector<256x64xf32>
    %86 = arith.select %83, %81, %85 : vector<256x64xi1>, vector<256x64xf32>
    %87 = arith.truncf %86 : vector<256x64xf32> to vector<256x64xbf16>
    %88 = vector.extract_strided_slice %87 {offsets = [0, 0], sizes = [16, 64], strides = [1, 1]} : vector<256x64xbf16> to vector<16x64xbf16>
    %c0_63 = arith.constant 0 : index
    %c1_64 = arith.constant 1 : index
    %c0_65 = arith.constant 0 : index
    %c0_66 = arith.constant 0 : index
    %89 = vector.load %arg4[%c0_63, %c1_64, %c0_65, %c0_66] : memref<16x2x16x64xbf16, #tpu.memory_space<vmem>>, vector<1x1x16x64xbf16>
    %90 = vector.shape_cast %89 : vector<1x1x16x64xbf16> to vector<16x64xbf16>
    %91 = vector.shape_cast %88 : vector<16x64xbf16> to vector<1x1x16x64xbf16>
    tpu.vector_store %arg4[%c0_63, %c1_64, %c0_65, %c0_66], %91 {strides = array<i32>} : memref<16x2x16x64xbf16, #tpu.memory_space<vmem>>, vector<1x1x16x64xbf16>,
    %92 = vector.extract_strided_slice %87 {offsets = [16, 0], sizes = [16, 64], strides = [1, 1]} : vector<256x64xbf16> to vector<16x64xbf16>
    %c1_67 = arith.constant 1 : index
    %c1_68 = arith.constant 1 : index
    %c0_69 = arith.constant 0 : index
    %c0_70 = arith.constant 0 : index
    %93 = vector.load %arg4[%c1_67, %c1_68, %c0_69, %c0_70] : memref<16x2x16x64xbf16, #tpu.memory_space<vmem>>, vector<1x1x16x64xbf16>
    %94 = vector.shape_cast %93 : vector<1x1x16x64xbf16> to vector<16x64xbf16>
    %95 = vector.shape_cast %92 : vector<16x64xbf16> to vector<1x1x16x64xbf16>
    tpu.vector_store %arg4[%c1_67, %c1_68, %c0_69, %c0_70], %95 {strides = array<i32>} : memref<16x2x16x64xbf16, #tpu.memory_space<vmem>>, vector<1x1x16x64xbf16>,
    %96 = vector.extract_strided_slice %87 {offsets = [32, 0], sizes = [16, 64], strides = [1, 1]} : vector<256x64xbf16> to vector<16x64xbf16>
    %c2_71 = arith.constant 2 : index
    %c1_72 = arith.constant 1 : index
    %c0_73 = arith.constant 0 : index
    %c0_74 = arith.constant 0 : index
    %97 = vector.load %arg4[%c2_71, %c1_72, %c0_73, %c0_74] : memref<16x2x16x64xbf16, #tpu.memory_space<vmem>>, vector<1x1x16x64xbf16>
    %98 = vector.shape_cast %97 : vector<1x1x16x64xbf16> to vector<16x64xbf16>
    %99 = vector.shape_cast %96 : vector<16x64xbf16> to vector<1x1x16x64xbf16>
    tpu.vector_store %arg4[%c2_71, %c1_72, %c0_73, %c0_74], %99 {strides = array<i32>} : memref<16x2x16x64xbf16, #tpu.memory_space<vmem>>, vector<1x1x16x64xbf16>,
    %100 = vector.extract_strided_slice %87 {offsets = [48, 0], sizes = [16, 64], strides = [1, 1]} : vector<256x64xbf16> to vector<16x64xbf16>
    %c3_75 = arith.constant 3 : index
    %c1_76 = arith.constant 1 : index
    %c0_77 = arith.constant 0 : index
    %c0_78 = arith.constant 0 : index
    %101 = vector.load %arg4[%c3_75, %c1_76, %c0_77, %c0_78] : memref<16x2x16x64xbf16, #tpu.memory_space<vmem>>, vector<1x1x16x64xbf16>
    %102 = vector.shape_cast %101 : vector<1x1x16x64xbf16> to vector<16x64xbf16>
    %103 = vector.shape_cast %100 : vector<16x64xbf16> to vector<1x1x16x64xbf16>
    tpu.vector_store %arg4[%c3_75, %c1_76, %c0_77, %c0_78], %103 {strides = array<i32>} : memref<16x2x16x64xbf16, #tpu.memory_space<vmem>>, vector<1x1x16x64xbf16>,
    %104 = vector.extract_strided_slice %87 {offsets = [64, 0], sizes = [16, 64], strides = [1, 1]} : vector<256x64xbf16> to vector<16x64xbf16>
    %c4_79 = arith.constant 4 : index
    %c1_80 = arith.constant 1 : index
    %c0_81 = arith.constant 0 : index
    %c0_82 = arith.constant 0 : index
    %105 = vector.load %arg4[%c4_79, %c1_80, %c0_81, %c0_82] : memref<16x2x16x64xbf16, #tpu.memory_space<vmem>>, vector<1x1x16x64xbf16>
    %106 = vector.shape_cast %105 : vector<1x1x16x64xbf16> to vector<16x64xbf16>
    %107 = vector.shape_cast %104 : vector<16x64xbf16> to vector<1x1x16x64xbf16>
    tpu.vector_store %arg4[%c4_79, %c1_80, %c0_81, %c0_82], %107 {strides = array<i32>} : memref<16x2x16x64xbf16, #tpu.memory_space<vmem>>, vector<1x1x16x64xbf16>,
    %108 = vector.extract_strided_slice %87 {offsets = [80, 0], sizes = [16, 64], strides = [1, 1]} : vector<256x64xbf16> to vector<16x64xbf16>
    %c5_83 = arith.constant 5 : index
    %c1_84 = arith.constant 1 : index
    %c0_85 = arith.constant 0 : index
    %c0_86 = arith.constant 0 : index
    %109 = vector.load %arg4[%c5_83, %c1_84, %c0_85, %c0_86] : memref<16x2x16x64xbf16, #tpu.memory_space<vmem>>, vector<1x1x16x64xbf16>
    %110 = vector.shape_cast %109 : vector<1x1x16x64xbf16> to vector<16x64xbf16>
    %111 = vector.shape_cast %108 : vector<16x64xbf16> to vector<1x1x16x64xbf16>
    tpu.vector_store %arg4[%c5_83, %c1_84, %c0_85, %c0_86], %111 {strides = array<i32>} : memref<16x2x16x64xbf16, #tpu.memory_space<vmem>>, vector<1x1x16x64xbf16>,
    %112 = vector.extract_strided_slice %87 {offsets = [96, 0], sizes = [16, 64], strides = [1, 1]} : vector<256x64xbf16> to vector<16x64xbf16>
    %c6_87 = arith.constant 6 : index
    %c1_88 = arith.constant 1 : index
    %c0_89 = arith.constant 0 : index
    %c0_90 = arith.constant 0 : index
    %113 = vector.load %arg4[%c6_87, %c1_88, %c0_89, %c0_90] : memref<16x2x16x64xbf16, #tpu.memory_space<vmem>>, vector<1x1x16x64xbf16>
    %114 = vector.shape_cast %113 : vector<1x1x16x64xbf16> to vector<16x64xbf16>
    %115 = vector.shape_cast %112 : vector<16x64xbf16> to vector<1x1x16x64xbf16>
    tpu.vector_store %arg4[%c6_87, %c1_88, %c0_89, %c0_90], %115 {strides = array<i32>} : memref<16x2x16x64xbf16, #tpu.memory_space<vmem>>, vector<1x1x16x64xbf16>,
    %116 = vector.extract_strided_slice %87 {offsets = [112, 0], sizes = [16, 64], strides = [1, 1]} : vector<256x64xbf16> to vector<16x64xbf16>
    %c7_91 = arith.constant 7 : index
    %c1_92 = arith.constant 1 : index
    %c0_93 = arith.constant 0 : index
    %c0_94 = arith.constant 0 : index
    %117 = vector.load %arg4[%c7_91, %c1_92, %c0_93, %c0_94] : memref<16x2x16x64xbf16, #tpu.memory_space<vmem>>, vector<1x1x16x64xbf16>
    %118 = vector.shape_cast %117 : vector<1x1x16x64xbf16> to vector<16x64xbf16>
    %119 = vector.shape_cast %116 : vector<16x64xbf16> to vector<1x1x16x64xbf16>
    tpu.vector_store %arg4[%c7_91, %c1_92, %c0_93, %c0_94], %119 {strides = array<i32>} : memref<16x2x16x64xbf16, #tpu.memory_space<vmem>>, vector<1x1x16x64xbf16>,
    %120 = vector.extract_strided_slice %87 {offsets = [128, 0], sizes = [16, 64], strides = [1, 1]} : vector<256x64xbf16> to vector<16x64xbf16>
    %c8_95 = arith.constant 8 : index
    %c1_96 = arith.constant 1 : index
    %c0_97 = arith.constant 0 : index
    %c0_98 = arith.constant 0 : index
    %121 = vector.load %arg4[%c8_95, %c1_96, %c0_97, %c0_98] : memref<16x2x16x64xbf16, #tpu.memory_space<vmem>>, vector<1x1x16x64xbf16>
    %122 = vector.shape_cast %121 : vector<1x1x16x64xbf16> to vector<16x64xbf16>
    %123 = vector.shape_cast %120 : vector<16x64xbf16> to vector<1x1x16x64xbf16>
    tpu.vector_store %arg4[%c8_95, %c1_96, %c0_97, %c0_98], %123 {strides = array<i32>} : memref<16x2x16x64xbf16, #tpu.memory_space<vmem>>, vector<1x1x16x64xbf16>,
    %124 = vector.extract_strided_slice %87 {offsets = [144, 0], sizes = [16, 64], strides = [1, 1]} : vector<256x64xbf16> to vector<16x64xbf16>
    %c9_99 = arith.constant 9 : index
    %c1_100 = arith.constant 1 : index
    %c0_101 = arith.constant 0 : index
    %c0_102 = arith.constant 0 : index
    %125 = vector.load %arg4[%c9_99, %c1_100, %c0_101, %c0_102] : memref<16x2x16x64xbf16, #tpu.memory_space<vmem>>, vector<1x1x16x64xbf16>
    %126 = vector.shape_cast %125 : vector<1x1x16x64xbf16> to vector<16x64xbf16>
    %127 = vector.shape_cast %124 : vector<16x64xbf16> to vector<1x1x16x64xbf16>
    tpu.vector_store %arg4[%c9_99, %c1_100, %c0_101, %c0_102], %127 {strides = array<i32>} : memref<16x2x16x64xbf16, #tpu.memory_space<vmem>>, vector<1x1x16x64xbf16>,
    %128 = vector.extract_strided_slice %87 {offsets = [160, 0], sizes = [16, 64], strides = [1, 1]} : vector<256x64xbf16> to vector<16x64xbf16>
    %c10_103 = arith.constant 10 : index
    %c1_104 = arith.constant 1 : index
    %c0_105 = arith.constant 0 : index
    %c0_106 = arith.constant 0 : index
    %129 = vector.load %arg4[%c10_103, %c1_104, %c0_105, %c0_106] : memref<16x2x16x64xbf16, #tpu.memory_space<vmem>>, vector<1x1x16x64xbf16>
    %130 = vector.shape_cast %129 : vector<1x1x16x64xbf16> to vector<16x64xbf16>
    %131 = vector.shape_cast %128 : vector<16x64xbf16> to vector<1x1x16x64xbf16>
    tpu.vector_store %arg4[%c10_103, %c1_104, %c0_105, %c0_106], %131 {strides = array<i32>} : memref<16x2x16x64xbf16, #tpu.memory_space<vmem>>, vector<1x1x16x64xbf16>,
    %132 = vector.extract_strided_slice %87 {offsets = [176, 0], sizes = [16, 64], strides = [1, 1]} : vector<256x64xbf16> to vector<16x64xbf16>
    %c11_107 = arith.constant 11 : index
    %c1_108 = arith.constant 1 : index
    %c0_109 = arith.constant 0 : index
    %c0_110 = arith.constant 0 : index
    %133 = vector.load %arg4[%c11_107, %c1_108, %c0_109, %c0_110] : memref<16x2x16x64xbf16, #tpu.memory_space<vmem>>, vector<1x1x16x64xbf16>
    %134 = vector.shape_cast %133 : vector<1x1x16x64xbf16> to vector<16x64xbf16>
    %135 = vector.shape_cast %132 : vector<16x64xbf16> to vector<1x1x16x64xbf16>
    tpu.vector_store %arg4[%c11_107, %c1_108, %c0_109, %c0_110], %135 {strides = array<i32>} : memref<16x2x16x64xbf16, #tpu.memory_space<vmem>>, vector<1x1x16x64xbf16>,
    %136 = vector.extract_strided_slice %87 {offsets = [192, 0], sizes = [16, 64], strides = [1, 1]} : vector<256x64xbf16> to vector<16x64xbf16>
    %c12_111 = arith.constant 12 : index
    %c1_112 = arith.constant 1 : index
    %c0_113 = arith.constant 0 : index
    %c0_114 = arith.constant 0 : index
    %137 = vector.load %arg4[%c12_111, %c1_112, %c0_113, %c0_114] : memref<16x2x16x64xbf16, #tpu.memory_space<vmem>>, vector<1x1x16x64xbf16>
    %138 = vector.shape_cast %137 : vector<1x1x16x64xbf16> to vector<16x64xbf16>
    %139 = vector.shape_cast %136 : vector<16x64xbf16> to vector<1x1x16x64xbf16>
    tpu.vector_store %arg4[%c12_111, %c1_112, %c0_113, %c0_114], %139 {strides = array<i32>} : memref<16x2x16x64xbf16, #tpu.memory_space<vmem>>, vector<1x1x16x64xbf16>,
    %140 = vector.extract_strided_slice %87 {offsets = [208, 0], sizes = [16, 64], strides = [1, 1]} : vector<256x64xbf16> to vector<16x64xbf16>
    %c13_115 = arith.constant 13 : index
    %c1_116 = arith.constant 1 : index
    %c0_117 = arith.constant 0 : index
    %c0_118 = arith.constant 0 : index
    %141 = vector.load %arg4[%c13_115, %c1_116, %c0_117, %c0_118] : memref<16x2x16x64xbf16, #tpu.memory_space<vmem>>, vector<1x1x16x64xbf16>
    %142 = vector.shape_cast %141 : vector<1x1x16x64xbf16> to vector<16x64xbf16>
    %143 = vector.shape_cast %140 : vector<16x64xbf16> to vector<1x1x16x64xbf16>
    tpu.vector_store %arg4[%c13_115, %c1_116, %c0_117, %c0_118], %143 {strides = array<i32>} : memref<16x2x16x64xbf16, #tpu.memory_space<vmem>>, vector<1x1x16x64xbf16>,
    %144 = vector.extract_strided_slice %87 {offsets = [224, 0], sizes = [16, 64], strides = [1, 1]} : vector<256x64xbf16> to vector<16x64xbf16>
    %c14_119 = arith.constant 14 : index
    %c1_120 = arith.constant 1 : index
    %c0_121 = arith.constant 0 : index
    %c0_122 = arith.constant 0 : index
    %145 = vector.load %arg4[%c14_119, %c1_120, %c0_121, %c0_122] : memref<16x2x16x64xbf16, #tpu.memory_space<vmem>>, vector<1x1x16x64xbf16>
    %146 = vector.shape_cast %145 : vector<1x1x16x64xbf16> to vector<16x64xbf16>
    %147 = vector.shape_cast %144 : vector<16x64xbf16> to vector<1x1x16x64xbf16>
    tpu.vector_store %arg4[%c14_119, %c1_120, %c0_121, %c0_122], %147 {strides = array<i32>} : memref<16x2x16x64xbf16, #tpu.memory_space<vmem>>, vector<1x1x16x64xbf16>,
    %148 = vector.extract_strided_slice %87 {offsets = [240, 0], sizes = [16, 64], strides = [1, 1]} : vector<256x64xbf16> to vector<16x64xbf16>
    %c15_123 = arith.constant 15 : index
    %c1_124 = arith.constant 1 : index
    %c0_125 = arith.constant 0 : index
    %c0_126 = arith.constant 0 : index
    %149 = vector.load %arg4[%c15_123, %c1_124, %c0_125, %c0_126] : memref<16x2x16x64xbf16, #tpu.memory_space<vmem>>, vector<1x1x16x64xbf16>
    %150 = vector.shape_cast %149 : vector<1x1x16x64xbf16> to vector<16x64xbf16>
    %151 = vector.shape_cast %148 : vector<16x64xbf16> to vector<1x1x16x64xbf16>
    tpu.vector_store %arg4[%c15_123, %c1_124, %c0_125, %c0_126], %151 {strides = array<i32>} : memref<16x2x16x64xbf16, #tpu.memory_space<vmem>>, vector<1x1x16x64xbf16>,
    return
  }
  func.func @transform_0(%arg0: i32) -> (i32, i32) {
    %c0_i32 = arith.constant 0 : i32
    %c0_i32_0 = arith.constant 0 : i32
    return %arg0, %c0_i32 : i32, i32
  }
  func.func @transform_1(%arg0: i32) -> (i32, i32, i32) {
    %c0_i32 = arith.constant 0 : i32
    %c0_i32_0 = arith.constant 0 : i32
    %c0_i32_1 = arith.constant 0 : i32
    %c0_i32_2 = arith.constant 0 : i32
    return %c0_i32, %c0_i32_0, %c0_i32_1 : i32, i32, i32
  }
  func.func @transform_2(%arg0: i32) -> (i32, i32) {
    %c0_i32 = arith.constant 0 : i32
    %c0_i32_0 = arith.constant 0 : i32
    %c0_i32_1 = arith.constant 0 : i32
    return %c0_i32, %c0_i32_0 : i32, i32
  }
  func.func @transform_3(%arg0: i32) -> (i32, i32, i32, i32) {
    %c0_i32 = arith.constant 0 : i32
    %c0_i32_0 = arith.constant 0 : i32
    %c0_i32_1 = arith.constant 0 : i32
    %c0_i32_2 = arith.constant 0 : i32
    return %arg0, %c0_i32, %c0_i32_0, %c0_i32_1 : i32, i32, i32, i32
  }
}

</mosaic_0001>

<bundles_post_ra>
// kernel: tile.19
= control target key start
LH: loop header
LB: loop body
LE: loop exit
PB: predicated region body
PF: predicated region fallthrough
CT: control target
= control target key end

     0   :  { %vm7_vm0 = vcmask 261120   ;;  %vm13_vm1 = vcmask 523520   ;;  %s39_s0 = inlined_call_operand.vmem [shape: f32[2,32], index: 0, kind: input, shape index: {}]   ;;  %s40_s1 = inlined_call_operand.vmem [shape: f32[1,64], index: 1, kind: output, shape index: {}]  }
   0x1   :  { %v4_v0 = vld [vmem:[%s39_s0] sm:$0x3]  ;;  %s22_s0 = smov 32  }
   0x2   :  { %5 = vst [vmem:[#allocation1] sm:$0x3] %v4_v0 }
   0x9   :  { %v10_v1 = vld [vmem:[#allocation1 + $0x1] sm:$0x1]   ;;  %v6_v2 = vld [vmem:[#allocation1] sm:$0x1]  }
   0xa   :  { %11 = vrot.lane.b32.xlu0 %v10_v1, %s22_s0  ;;  %8 = vst.msk [vmem:[#allocation0] sm:$0x1] %vm7_vm0, %v6_v2  }
  0x7c   :  { %v12_v3 = vpop.permute.xlu0 %11  }
  0x7d   :  { %14 = vst.msk [vmem:[#allocation0] sm:$0x1] %vm13_vm1, %v12_v3  }
  0x84   :  { %v17_v4 = vld [vmem:[#allocation0] sm:$0x1] }
  0x85   :  { %20 = vst [vmem:[%s40_s1] sm:$0x1] %v17_v4 }

// kernel: mul.7
= control target key start
LH: loop header
LB: loop body
LE: loop exit
PB: predicated region body
PF: predicated region fallthrough
CT: control target
= control target key end

     0   :  { %vm7_vm0 = vcmask 261120   ;;  %vm13_vm1 = vcmask 523520   ;;  %s39_s0 = inlined_call_operand.vmem [shape: f32[2,32], index: 0, kind: input, shape index: {}]   ;;  %s40_s1 = inlined_call_operand.vmem [shape: f32[64], index: 1, kind: output, shape index: {}]  }
   0x1   :  { %v4_v0 = vld [vmem:[%s39_s0] sm:$0x3]  ;;  %s22_s0 = smov 32  }
   0x2   :  { %5 = vst [vmem:[#allocation1] sm:$0x3] %v4_v0 }
   0x9   :  { %v10_v1 = vld [vmem:[#allocation1 + $0x1] sm:$0x1]   ;;  %v6_v2 = vld [vmem:[#allocation1] sm:$0x1]  }
   0xa   :  { %11 = vrot.lane.b32.xlu0 %v10_v1, %s22_s0  ;;  %8 = vst.msk [vmem:[#allocation0] sm:$0x1] %vm7_vm0, %v6_v2  }
  0x7c   :  { %v12_v3 = vpop.permute.xlu0 %11  }
  0x7d   :  { %14 = vst.msk [vmem:[#allocation0] sm:$0x1] %vm13_vm1, %v12_v3  }
  0x84   :  { %v17_v4 = vld [vmem:[#allocation0] sm:$0x1] }
  0x85   :  { %20 = vst [vmem:[%s40_s1] sm:$0x1] %v17_v4 }

// kernel: tile.18
= control target key start
LH: loop header
LB: loop body
LE: loop exit
PB: predicated region body
PF: predicated region fallthrough
CT: control target
= control target key end

     0   :  { %s22_s0 = inlined_call_operand.vmem [shape: f32[32], index: 0, kind: input, shape index: {}]   ;;  %s23_s1 = inlined_call_operand.vmem [shape: f32[2,32], index: 1, kind: output, shape index: {}]  }
   0x1   :  { %v4_v0 = vld [vmem:[%s22_s0] ss:$0 sm:$0xff] }
   0x2   :  { %5 = vst [vmem:[%s23_s1] sm:$0x3] %v4_v0 }

// kernel: up_forward.1
= control target key start
LH: loop header
LB: loop body
LE: loop exit
PB: predicated region body
PF: predicated region fallthrough
CT: control target
= control target key end

     0   :  { %s1275_s12 = smov 0   ;;  %s1569_s0 = inlined_call_operand.vmem [shape: bf16[512,64], index: 0, kind: input, shape index: {}]   ;;  %s1570_s1 = inlined_call_operand.vmem [shape: bf16[2,64,64], index: 1, kind: input, shape index: {}]   ;;  %s1571_s2 = inlined_call_operand.vmem [shape: f32[1,64], index: 2, kind: input, shape index: {}]   ;;  %s1572_s3 = inlined_call_operand.vmem [shape: bf16[32,2,16,64], index: 3, kind: output, shape index: {}]  }
   0x1 LB: > { %s995_s13 = sadd.s32 4294967295, %s1253_s12   ;;  %p999_p0 = scmp.ge.s32.totalorder %s1253_s12, 1  ;;  %s1253_s12 = sphi %s1275_s12, %s13_s12  }
   0x2   : > { %p138_p1 = scmp.lt.s32.totalorder %s1253_s12, 3 }
   0x4   : > { %p139_p2 = pnand %p999_p0, %p138_p1 }
   0x5   : > { %s1000_s18 = sshll.u32 (!%p139_p2), %s995_s13, 5  ;;  %s1002_s8 = sshll.u32 (!%p139_p2), %s995_s13, 4 }
   0x6   : > { %142 = sbr.rel (%p139_p2) target bundleno = 288 (0x120), region = 32  ;;  %p164_p3 = scmp.lt.s32.totalorder (!%p139_p2), %s1000_s18, 63 }
   0x7   : > { %p170_p4 = scmp.lt.s32.totalorder (!%p139_p2), %s1002_s8, 31 }
   0xb   : > { %v1225_v0 = vld [vmem:[%s1570_s1 + $0x18] sm:$0xff]  ;;  %v1224_v2 = vld [vmem:[%s1570_s1 + $0x10] sm:$0xff]  ;;  %s1574_s18 = smov (!%p164_p3, %s1000_s18), 63  ;;  %v1223_v4 = vld [vmem:[%s1570_s1 + $0x8] sm:$0xff]  ;;  %vm325_vm0 = vcmask 523264   ;;  %s1576_s8 = smov (!%p170_p4, %s1002_s8), 31 }
   0xc   : > { %v1229_v1 = vld [vmem:[%s1570_s1 + $0x38] sm:$0xff]  ;;  %378 = vmatpush.bf16.msra.mxu0 %v1225_v0  ;;  %1230 = vmatpush.bf16.msra.mxu2 %v1225_v0  ;;  %v1228_v3 = vld [vmem:[%s1570_s1 + $0x30] sm:$0xff]  ;;  %v1227_v5 = vld [vmem:[%s1570_s1 + $0x28] sm:$0xff]  ;;  %s1001_s27 = sshll.u32 %s1574_s18, 2  ;;  %s1205_s11 = sshll.u32 %s1576_s8, 4  ;;  %vm591_vm3 = vcmask 519168  }
   0xd   : > { %676 = vmatpush.bf16.msra.mxu1 %v1229_v1  ;;  %1234 = vmatpush.bf16.msra.mxu3 %v1229_v1  ;;  %v1222_v6 = vld [vmem:[%s1570_s1] sm:$0xff]  ;;  %s1309_s5 = scalar_lea.vmem %s1569_s0, %s1001_s27  ;;  %s1374_s15 = scalar_lea.vmem %s1572_s3, %s1205_s11 }
   0xe   : > { %v1226_v7 = vld [vmem:[%s1570_s1 + $0x20] sm:$0xff]  ;;  %v1207_v10 = vld [vmem:[%s1309_s5 + $0x8] sm:$0xff]  ;;  %v1208_v12 = vld [vmem:[%s1309_s5 + $0x10] sm:$0xff] }
   0xf   : > { %v1206_v8 = vld [vmem:[%s1309_s5] sm:$0xff]  ;;  %v1215_v11 = vld [vmem:[%s1309_s5 + $0x48] sm:$0xff]  ;;  %v1216_v13 = vld [vmem:[%s1309_s5 + $0x50] sm:$0xff] }
  0x10   : > { %379 = vmatpush.bf16.msra.mxu0 %v1224_v2  ;;  %1231 = vmatpush.bf16.msra.mxu2 %v1224_v2  ;;  %v1214_v9 = vld [vmem:[%s1309_s5 + $0x40] sm:$0xff]  ;;  %v1209_v14 = vld [vmem:[%s1309_s5 + $0x18] sm:$0xff]  ;;  %v1211_v18 = vld [vmem:[%s1309_s5 + $0x28] sm:$0xff] }
  0x11   : > { %677 = vmatpush.bf16.msra.mxu1 %v1228_v3  ;;  %1235 = vmatpush.bf16.msra.mxu3 %v1228_v3  ;;  %v1217_v15 = vld [vmem:[%s1309_s5 + $0x58] sm:$0xff]  ;;  %v1210_v16 = vld [vmem:[%s1309_s5 + $0x20] sm:$0xff]  ;;  %v1219_v19 = vld [vmem:[%s1309_s5 + $0x68] sm:$0xff] }
  0x12   : > { %v1218_v17 = vld [vmem:[%s1309_s5 + $0x60] sm:$0xff]  ;;  %v1212_v20 = vld [vmem:[%s1309_s5 + $0x30] sm:$0xff]  ;;  %v1213_v22 = vld [vmem:[%s1309_s5 + $0x38] sm:$0xff] }
  0x13   : > { %v1220_v21 = vld [vmem:[%s1309_s5 + $0x70] sm:$0xff]  ;;  %v1221_v23 = vld [vmem:[%s1309_s5 + $0x78] sm:$0xff]  ;;  %v1367_v24 = vld [vmem:[%s1571_s2] ss:$0 sm:$0xff] }
  0x14   : > { %380 = vmatpush.bf16.msra.mxu0 %v1223_v4  ;;  %1232 = vmatpush.bf16.msra.mxu2 %v1223_v4 }
  0x15   : > { %678 = vmatpush.bf16.msra.mxu1 %v1227_v5  ;;  %1236 = vmatpush.bf16.msra.mxu3 %v1227_v5 }
  0x18   : > { %381 = vmatpush.bf16.msra.mxu0 %v1222_v6  ;;  %1233 = vmatpush.bf16.msra.mxu2 %v1222_v6 }
  0x19   : > { %679 = vmatpush.bf16.msra.mxu1 %v1226_v7  ;;  %1237 = vmatpush.bf16.msra.mxu3 %v1226_v7 }
  0x1b   : > { %1085 = vmatmul.msk.bf16.vlgmr.msra.gmra.mxu0 %vm325_vm0, %v1206_v8  ;;  %1093 = vmatmul.msk.bf16.vlgmr.msra.gmra.mxu2 %vm325_vm0, %v1214_v9 }
  0x1c   : > { %1155 = vmatmul.msk.bf16.vlgmr.msra.gmra.mxu1 %vm325_vm0, %v1206_v8  ;;  %1163 = vmatmul.msk.bf16.vlgmr.msra.gmra.mxu3 %vm325_vm0, %v1214_v9 }
  0x2b   : > { %1086 = vmatmul.msk.bf16.gmra.mxu0 %vm325_vm0, %v1207_v10  ;;  %1094 = vmatmul.msk.bf16.gmra.mxu2 %vm325_vm0, %v1215_v11 }
  0x2c   : > { %1156 = vmatmul.msk.bf16.gmra.mxu1 %vm325_vm0, %v1207_v10  ;;  %1164 = vmatmul.msk.bf16.gmra.mxu3 %vm325_vm0, %v1215_v11 }
  0x3b   : > { %1087 = vmatmul.msk.bf16.gmra.mxu0 %vm325_vm0, %v1208_v12  ;;  %1095 = vmatmul.msk.bf16.gmra.mxu2 %vm325_vm0, %v1216_v13 }
  0x3c   : > { %1157 = vmatmul.msk.bf16.gmra.mxu1 %vm325_vm0, %v1208_v12  ;;  %1165 = vmatmul.msk.bf16.gmra.mxu3 %vm325_vm0, %v1216_v13 }
  0x4b   : > { %1088 = vmatmul.msk.bf16.gmra.mxu0 %vm325_vm0, %v1209_v14  ;;  %1096 = vmatmul.msk.bf16.gmra.mxu2 %vm325_vm0, %v1217_v15 }
  0x4c   : > { %1158 = vmatmul.msk.bf16.gmra.mxu1 %vm325_vm0, %v1209_v14  ;;  %1166 = vmatmul.msk.bf16.gmra.mxu3 %vm325_vm0, %v1217_v15 }
  0x5b   : > { %1089 = vmatmul.msk.bf16.gmra.mxu0 %vm325_vm0, %v1210_v16  ;;  %1097 = vmatmul.msk.bf16.gmra.mxu2 %vm325_vm0, %v1218_v17 }
  0x5c   : > { %1159 = vmatmul.msk.bf16.gmra.mxu1 %vm325_vm0, %v1210_v16  ;;  %1167 = vmatmul.msk.bf16.gmra.mxu3 %vm325_vm0, %v1218_v17 }
  0x6b   : > { %1090 = vmatmul.msk.bf16.gmra.mxu0 %vm325_vm0, %v1211_v18  ;;  %1098 = vmatmul.msk.bf16.gmra.mxu2 %vm325_vm0, %v1219_v19 }
  0x6c   : > { %1160 = vmatmul.msk.bf16.gmra.mxu1 %vm325_vm0, %v1211_v18  ;;  %1168 = vmatmul.msk.bf16.gmra.mxu3 %vm325_vm0, %v1219_v19 }
  0x7b   : > { %1091 = vmatmul.msk.bf16.gmra.mxu0 %vm325_vm0, %v1212_v20  ;;  %1099 = vmatmul.msk.bf16.gmra.mxu2 %vm325_vm0, %v1220_v21 }
  0x7c   : > { %1161 = vmatmul.msk.bf16.gmra.mxu1 %vm325_vm0, %v1212_v20  ;;  %1169 = vmatmul.msk.bf16.gmra.mxu3 %vm325_vm0, %v1220_v21 }
  0x8b   : > { %1092 = vmatmul.msk.bf16.gmra.mxu0 %vm325_vm0, %v1213_v22  ;;  %1100 = vmatmul.msk.bf16.gmra.mxu2 %vm325_vm0, %v1221_v23 }
  0x8c   : > { %1162 = vmatmul.msk.bf16.gmra.mxu1 %vm325_vm0, %v1213_v22  ;;  %1170 = vmatmul.msk.bf16.gmra.mxu3 %vm325_vm0, %v1221_v23 }
  0x98   : > { %v383_v25 = vpop.f32.mrf.mxu0 }
  0x99   : > { %v384_v26 = vadd.f32 %v1367_v24, %v383_v25  ;;  %v681_v27 = vpop.f32.mrf.mxu1 }
  0x9a   : > { %v682_v28 = vadd.f32 %v1367_v24, %v681_v27 }
  0x9b   : > { %vm463_vm1 = vcmp.ge.f32.partialorder %v384_v26, 0.0  ;;  %v495_v29 = vmul.f32 0.1, %v384_v26 }
  0x9c   : > { %vm761_vm2 = vcmp.ge.f32.partialorder %v682_v28, 0.0  ;;  %v793_v30 = vmul.f32 0.1, %v682_v28 }
  0x9d   : > { %v527_v31 = vsel %vm463_vm1, %v384_v26, %v495_v29 }
  0x9e   : > { %v559_v32 = vpack.c.bf16 %v527_v31, %v527_v31  ;;  %v825_v33 = vsel %vm761_vm2, %v682_v28, %v793_v30  ;;  %v423_v34 = vpop.f32.mrf.mxu2 }
  0x9f   : > { %v857_v35 = vpack.c.bf16 %v825_v33, %v825_v33  ;;  %v424_v36 = vadd.f32 %v1367_v24, %v423_v34  ;;  %v721_v37 = vpop.f32.mrf.mxu3 }
  0xa0   : > { %592 = vst.msk [vmem:[%s1374_s15] sm:$0xf] %vm591_vm3, %v559_v32  ;;  %v722_v38 = vadd.f32 %v1367_v24, %v721_v37  ;;  %v385_v39 = vpop.f32.mrf.mxu0 }
  0xa1   : > { %1171 = vst.msk [vmem:[%s1374_s15 + $0x8] sm:$0xf] %vm591_vm3, %v857_v35  ;;  %vm479_vm4 = vcmp.ge.f32.partialorder %v424_v36, 0.0  ;;  %v511_v40 = vmul.f32 0.1, %v424_v36  ;;  %v386_v41 = vadd.f32 %v1367_v24, %v385_v39  ;;  %v683_v42 = vpop.f32.mrf.mxu1 }
  0xa2   : > { %vm777_vm5 = vcmp.ge.f32.partialorder %v722_v38, 0.0  ;;  %v809_v43 = vmul.f32 0.1, %v722_v38  ;;  %v684_v44 = vadd.f32 %v1367_v24, %v683_v42 }
  0xa3   : > { %v543_v45 = vsel %vm479_vm4, %v424_v36, %v511_v40  ;;  %vm464_vm6 = vcmp.ge.f32.partialorder %v386_v41, 0.0  ;;  %v496_v46 = vmul.f32 0.1, %v386_v41 }
  0xa4   : > { %v575_v47 = vpack.c.bf16 %v543_v45, %v543_v45  ;;  %v841_v48 = vsel %vm777_vm5, %v722_v38, %v809_v43  ;;  %vm762_vm7 = vcmp.ge.f32.partialorder %v684_v44, 0.0  ;;  %v794_v49 = vmul.f32 0.1, %v684_v44 }
  0xa5   : > { %v873_v50 = vpack.c.bf16 %v841_v48, %v841_v48  ;;  %v528_v51 = vsel %vm464_vm6, %v386_v41, %v496_v46 }
  0xa6   : > { %1115 = vst.msk [vmem:[%s1374_s15 + $0x80] sm:$0xf] %vm591_vm3, %v575_v47  ;;  %v560_v52 = vpack.c.bf16 %v528_v51, %v528_v51  ;;  %v826_v53 = vsel %vm762_vm7, %v684_v44, %v794_v49  ;;  %v425_v54 = vpop.f32.mrf.mxu2 }
  0xa7   : > { %1187 = vst.msk [vmem:[%s1374_s15 + $0x88] sm:$0xf] %vm591_vm3, %v873_v50  ;;  %v858_v55 = vpack.c.bf16 %v826_v53, %v826_v53  ;;  %v426_v56 = vadd.f32 %v1367_v24, %v425_v54  ;;  %v723_v57 = vpop.f32.mrf.mxu3 }
  0xa8   : > { %593 = vst.msk [vmem:[%s1374_s15 + $0x4] sm:$0xf] %vm591_vm3, %v560_v52  ;;  %v724_v58 = vadd.f32 %v1367_v24, %v723_v57  ;;  %v388_v59 = vpop.f32.mrf.mxu0 }
  0xa9   : > { %1172 = vst.msk [vmem:[%s1374_s15 + $0xc] sm:$0xf] %vm591_vm3, %v858_v55  ;;  %vm480_vm8 = vcmp.ge.f32.partialorder %v426_v56, 0.0  ;;  %v512_v60 = vmul.f32 0.1, %v426_v56  ;;  %v389_v61 = vadd.f32 %v1367_v24, %v388_v59  ;;  %v686_v62 = vpop.f32.mrf.mxu1 }
  0xaa   : > { %vm778_vm9 = vcmp.ge.f32.partialorder %v724_v58, 0.0  ;;  %v810_v63 = vmul.f32 0.1, %v724_v58  ;;  %v687_v0 = vadd.f32 %v1367_v24, %v686_v62 }
  0xab   : > { %v544_v1 = vsel %vm480_vm8, %v426_v56, %v512_v60  ;;  %vm465_vm10 = vcmp.ge.f32.partialorder %v389_v61, 0.0  ;;  %v497_v2 = vmul.f32 0.1, %v389_v61 }
  0xac   : > { %v576_v3 = vpack.c.bf16 %v544_v1, %v544_v1  ;;  %v842_v4 = vsel %vm778_vm9, %v724_v58, %v810_v63  ;;  %vm763_vm11 = vcmp.ge.f32.partialorder %v687_v0, 0.0  ;;  %v795_v5 = vmul.f32 0.1, %v687_v0 }
  0xad   : > { %v874_v6 = vpack.c.bf16 %v842_v4, %v842_v4  ;;  %v529_v7 = vsel %vm465_vm10, %v389_v61, %v497_v2 }
  0xae   : > { %1116 = vst.msk [vmem:[%s1374_s15 + $0x84] sm:$0xf] %vm591_vm3, %v576_v3  ;;  %v561_v8 = vpack.c.bf16 %v529_v7, %v529_v7  ;;  %v827_v9 = vsel %vm763_vm11, %v687_v0, %v795_v5  ;;  %v428_v10 = vpop.f32.mrf.mxu2 }
  0xaf   : > { %1188 = vst.msk [vmem:[%s1374_s15 + $0x8c] sm:$0xf] %vm591_vm3, %v874_v6  ;;  %v859_v11 = vpack.c.bf16 %v827_v9, %v827_v9  ;;  %v429_v12 = vadd.f32 %v1367_v24, %v428_v10  ;;  %v726_v13 = vpop.f32.mrf.mxu3 }
  0xb0   : > { %1101 = vst.msk [vmem:[%s1374_s15 + $0x10] sm:$0xf] %vm591_vm3, %v561_v8  ;;  %v727_v14 = vadd.f32 %v1367_v24, %v726_v13  ;;  %v390_v15 = vpop.f32.mrf.mxu0 }
  0xb1   : > { %1173 = vst.msk [vmem:[%s1374_s15 + $0x18] sm:$0xf] %vm591_vm3, %v859_v11  ;;  %vm481_vm12 = vcmp.ge.f32.partialorder %v429_v12, 0.0  ;;  %v513_v16 = vmul.f32 0.1, %v429_v12  ;;  %v391_v17 = vadd.f32 %v1367_v24, %v390_v15  ;;  %v688_v18 = vpop.f32.mrf.mxu1 }
  0xb2   : > { %vm779_vm13 = vcmp.ge.f32.partialorder %v727_v14, 0.0  ;;  %v811_v19 = vmul.f32 0.1, %v727_v14  ;;  %v689_v20 = vadd.f32 %v1367_v24, %v688_v18 }
  0xb3   : > { %v545_v21 = vsel %vm481_vm12, %v429_v12, %v513_v16  ;;  %vm466_vm14 = vcmp.ge.f32.partialorder %v391_v17, 0.0  ;;  %v498_v22 = vmul.f32 0.1, %v391_v17 }
  0xb4   : > { %v577_v23 = vpack.c.bf16 %v545_v21, %v545_v21  ;;  %v843_v25 = vsel %vm779_vm13, %v727_v14, %v811_v19  ;;  %vm764_vm15 = vcmp.ge.f32.partialorder %v689_v20, 0.0  ;;  %v796_v26 = vmul.f32 0.1, %v689_v20 }
  0xb5   : > { %v875_v27 = vpack.c.bf16 %v843_v25, %v843_v25  ;;  %v530_v28 = vsel %vm466_vm14, %v391_v17, %v498_v22 }
  0xb6   : > { %1117 = vst.msk [vmem:[%s1374_s15 + $0x90] sm:$0xf] %vm591_vm3, %v577_v23  ;;  %v562_v29 = vpack.c.bf16 %v530_v28, %v530_v28  ;;  %v828_v30 = vsel %vm764_vm15, %v689_v20, %v796_v26  ;;  %v430_v31 = vpop.f32.mrf.mxu2 }
  0xb7   : > { %1189 = vst.msk [vmem:[%s1374_s15 + $0x98] sm:$0xf] %vm591_vm3, %v875_v27  ;;  %v860_v32 = vpack.c.bf16 %v828_v30, %v828_v30  ;;  %v431_v33 = vadd.f32 %v1367_v24, %v430_v31  ;;  %v728_v34 = vpop.f32.mrf.mxu3 }
  0xb8   : > { %1102 = vst.msk [vmem:[%s1374_s15 + $0x14] sm:$0xf] %vm591_vm3, %v562_v29  ;;  %v729_v35 = vadd.f32 %v1367_v24, %v728_v34  ;;  %v393_v36 = vpop.f32.mrf.mxu0 }
  0xb9   : > { %1174 = vst.msk [vmem:[%s1374_s15 + $0x1c] sm:$0xf] %vm591_vm3, %v860_v32  ;;  %vm482_vm0 = vcmp.ge.f32.partialorder %v431_v33, 0.0  ;;  %v514_v37 = vmul.f32 0.1, %v431_v33  ;;  %v394_v38 = vadd.f32 %v1367_v24, %v393_v36  ;;  %v691_v39 = vpop.f32.mrf.mxu1 }
  0xba   : > { %vm780_vm1 = vcmp.ge.f32.partialorder %v729_v35, 0.0  ;;  %v812_v40 = vmul.f32 0.1, %v729_v35  ;;  %v692_v41 = vadd.f32 %v1367_v24, %v691_v39 }
  0xbb   : > { %v546_v42 = vsel %vm482_vm0, %v431_v33, %v514_v37  ;;  %vm467_vm2 = vcmp.ge.f32.partialorder %v394_v38, 0.0  ;;  %v499_v43 = vmul.f32 0.1, %v394_v38 }
  0xbc   : > { %v578_v44 = vpack.c.bf16 %v546_v42, %v546_v42  ;;  %v844_v45 = vsel %vm780_vm1, %v729_v35, %v812_v40  ;;  %vm765_vm4 = vcmp.ge.f32.partialorder %v692_v41, 0.0  ;;  %v797_v46 = vmul.f32 0.1, %v692_v41 }
  0xbd   : > { %v876_v47 = vpack.c.bf16 %v844_v45, %v844_v45  ;;  %v531_v48 = vsel %vm467_vm2, %v394_v38, %v499_v43 }
  0xbe   : > { %1118 = vst.msk [vmem:[%s1374_s15 + $0x94] sm:$0xf] %vm591_vm3, %v578_v44  ;;  %v563_v49 = vpack.c.bf16 %v531_v48, %v531_v48  ;;  %v829_v50 = vsel %vm765_vm4, %v692_v41, %v797_v46  ;;  %v433_v51 = vpop.f32.mrf.mxu2 }
  0xbf   : > { %1190 = vst.msk [vmem:[%s1374_s15 + $0x9c] sm:$0xf] %vm591_vm3, %v876_v47  ;;  %v861_v52 = vpack.c.bf16 %v829_v50, %v829_v50  ;;  %v434_v53 = vadd.f32 %v1367_v24, %v433_v51  ;;  %v731_v54 = vpop.f32.mrf.mxu3 }
  0xc0   : > { %1103 = vst.msk [vmem:[%s1374_s15 + $0x20] sm:$0xf] %vm591_vm3, %v563_v49  ;;  %v732_v55 = vadd.f32 %v1367_v24, %v731_v54  ;;  %v395_v56 = vpop.f32.mrf.mxu0 }
  0xc1   : > { %1175 = vst.msk [vmem:[%s1374_s15 + $0x28] sm:$0xf] %vm591_vm3, %v861_v52  ;;  %vm483_vm5 = vcmp.ge.f32.partialorder %v434_v53, 0.0  ;;  %v515_v57 = vmul.f32 0.1, %v434_v53  ;;  %v396_v58 = vadd.f32 %v1367_v24, %v395_v56  ;;  %v693_v59 = vpop.f32.mrf.mxu1 }
  0xc2   : > { %vm781_vm6 = vcmp.ge.f32.partialorder %v732_v55, 0.0  ;;  %v813_v60 = vmul.f32 0.1, %v732_v55  ;;  %v694_v61 = vadd.f32 %v1367_v24, %v693_v59 }
  0xc3   : > { %v547_v62 = vsel %vm483_vm5, %v434_v53, %v515_v57  ;;  %vm468_vm7 = vcmp.ge.f32.partialorder %v396_v58, 0.0  ;;  %v500_v63 = vmul.f32 0.1, %v396_v58 }
  0xc4   : > { %v579_v0 = vpack.c.bf16 %v547_v62, %v547_v62  ;;  %v845_v1 = vsel %vm781_vm6, %v732_v55, %v813_v60  ;;  %vm766_vm8 = vcmp.ge.f32.partialorder %v694_v61, 0.0  ;;  %v798_v2 = vmul.f32 0.1, %v694_v61 }
  0xc5   : > { %v877_v3 = vpack.c.bf16 %v845_v1, %v845_v1  ;;  %v532_v4 = vsel %vm468_vm7, %v396_v58, %v500_v63 }
  0xc6   : > { %1119 = vst.msk [vmem:[%s1374_s15 + $0xa0] sm:$0xf] %vm591_vm3, %v579_v0  ;;  %v564_v5 = vpack.c.bf16 %v532_v4, %v532_v4  ;;  %v830_v6 = vsel %vm766_vm8, %v694_v61, %v798_v2  ;;  %v435_v7 = vpop.f32.mrf.mxu2 }
  0xc7   : > { %1191 = vst.msk [vmem:[%s1374_s15 + $0xa8] sm:$0xf] %vm591_vm3, %v877_v3  ;;  %v862_v8 = vpack.c.bf16 %v830_v6, %v830_v6  ;;  %v436_v9 = vadd.f32 %v1367_v24, %v435_v7  ;;  %v733_v10 = vpop.f32.mrf.mxu3 }
  0xc8   : > { %1104 = vst.msk [vmem:[%s1374_s15 + $0x24] sm:$0xf] %vm591_vm3, %v564_v5  ;;  %v734_v11 = vadd.f32 %v1367_v24, %v733_v10  ;;  %v398_v12 = vpop.f32.mrf.mxu0 }
  0xc9   : > { %1176 = vst.msk [vmem:[%s1374_s15 + $0x2c] sm:$0xf] %vm591_vm3, %v862_v8  ;;  %vm484_vm9 = vcmp.ge.f32.partialorder %v436_v9, 0.0  ;;  %v516_v13 = vmul.f32 0.1, %v436_v9  ;;  %v399_v14 = vadd.f32 %v1367_v24, %v398_v12  ;;  %v696_v15 = vpop.f32.mrf.mxu1 }
  0xca   : > { %vm782_vm10 = vcmp.ge.f32.partialorder %v734_v11, 0.0  ;;  %v814_v16 = vmul.f32 0.1, %v734_v11  ;;  %v697_v17 = vadd.f32 %v1367_v24, %v696_v15 }
  0xcb   : > { %v548_v18 = vsel %vm484_vm9, %v436_v9, %v516_v13  ;;  %vm469_vm11 = vcmp.ge.f32.partialorder %v399_v14, 0.0  ;;  %v501_v19 = vmul.f32 0.1, %v399_v14 }
  0xcc   : > { %v580_v20 = vpack.c.bf16 %v548_v18, %v548_v18  ;;  %v846_v21 = vsel %vm782_vm10, %v734_v11, %v814_v16  ;;  %vm767_vm12 = vcmp.ge.f32.partialorder %v697_v17, 0.0  ;;  %v799_v22 = vmul.f32 0.1, %v697_v17 }
  0xcd   : > { %v878_v23 = vpack.c.bf16 %v846_v21, %v846_v21  ;;  %v533_v25 = vsel %vm469_vm11, %v399_v14, %v501_v19 }
  0xce   : > { %1120 = vst.msk [vmem:[%s1374_s15 + $0xa4] sm:$0xf] %vm591_vm3, %v580_v20  ;;  %v565_v26 = vpack.c.bf16 %v533_v25, %v533_v25  ;;  %v831_v27 = vsel %vm767_vm12, %v697_v17, %v799_v22  ;;  %v438_v28 = vpop.f32.mrf.mxu2 }
  0xcf   : > { %1192 = vst.msk [vmem:[%s1374_s15 + $0xac] sm:$0xf] %vm591_vm3, %v878_v23  ;;  %v863_v29 = vpack.c.bf16 %v831_v27, %v831_v27  ;;  %v439_v30 = vadd.f32 %v1367_v24, %v438_v28  ;;  %v736_v31 = vpop.f32.mrf.mxu3 }
  0xd0   : > { %1105 = vst.msk [vmem:[%s1374_s15 + $0x30] sm:$0xf] %vm591_vm3, %v565_v26  ;;  %v737_v32 = vadd.f32 %v1367_v24, %v736_v31  ;;  %v400_v33 = vpop.f32.mrf.mxu0 }
  0xd1   : > { %1177 = vst.msk [vmem:[%s1374_s15 + $0x38] sm:$0xf] %vm591_vm3, %v863_v29  ;;  %vm485_vm13 = vcmp.ge.f32.partialorder %v439_v30, 0.0  ;;  %v517_v34 = vmul.f32 0.1, %v439_v30  ;;  %v401_v35 = vadd.f32 %v1367_v24, %v400_v33  ;;  %v698_v36 = vpop.f32.mrf.mxu1 }
  0xd2   : > { %vm783_vm14 = vcmp.ge.f32.partialorder %v737_v32, 0.0  ;;  %v815_v37 = vmul.f32 0.1, %v737_v32  ;;  %v699_v38 = vadd.f32 %v1367_v24, %v698_v36 }
  0xd3   : > { %v549_v39 = vsel %vm485_vm13, %v439_v30, %v517_v34  ;;  %vm470_vm15 = vcmp.ge.f32.partialorder %v401_v35, 0.0  ;;  %v502_v40 = vmul.f32 0.1, %v401_v35 }
  0xd4   : > { %v581_v41 = vpack.c.bf16 %v549_v39, %v549_v39  ;;  %v847_v42 = vsel %vm783_vm14, %v737_v32, %v815_v37  ;;  %vm768_vm0 = vcmp.ge.f32.partialorder %v699_v38, 0.0  ;;  %v800_v43 = vmul.f32 0.1, %v699_v38 }
  0xd5   : > { %v879_v44 = vpack.c.bf16 %v847_v42, %v847_v42  ;;  %v534_v45 = vsel %vm470_vm15, %v401_v35, %v502_v40 }
  0xd6   : > { %1121 = vst.msk [vmem:[%s1374_s15 + $0xb0] sm:$0xf] %vm591_vm3, %v581_v41  ;;  %v566_v46 = vpack.c.bf16 %v534_v45, %v534_v45  ;;  %v832_v47 = vsel %vm768_vm0, %v699_v38, %v800_v43  ;;  %v440_v48 = vpop.f32.mrf.mxu2 }
  0xd7   : > { %1193 = vst.msk [vmem:[%s1374_s15 + $0xb8] sm:$0xf] %vm591_vm3, %v879_v44  ;;  %v864_v49 = vpack.c.bf16 %v832_v47, %v832_v47  ;;  %v441_v50 = vadd.f32 %v1367_v24, %v440_v48  ;;  %v738_v51 = vpop.f32.mrf.mxu3 }
  0xd8   : > { %1106 = vst.msk [vmem:[%s1374_s15 + $0x34] sm:$0xf] %vm591_vm3, %v566_v46  ;;  %v739_v52 = vadd.f32 %v1367_v24, %v738_v51  ;;  %v403_v53 = vpop.f32.mrf.mxu0 }
  0xd9   : > { %1178 = vst.msk [vmem:[%s1374_s15 + $0x3c] sm:$0xf] %vm591_vm3, %v864_v49  ;;  %vm486_vm1 = vcmp.ge.f32.partialorder %v441_v50, 0.0  ;;  %v518_v54 = vmul.f32 0.1, %v441_v50  ;;  %v404_v55 = vadd.f32 %v1367_v24, %v403_v53  ;;  %v701_v56 = vpop.f32.mrf.mxu1 }
  0xda   : > { %vm784_vm2 = vcmp.ge.f32.partialorder %v739_v52, 0.0  ;;  %v816_v57 = vmul.f32 0.1, %v739_v52  ;;  %v702_v58 = vadd.f32 %v1367_v24, %v701_v56 }
  0xdb   : > { %v550_v59 = vsel %vm486_vm1, %v441_v50, %v518_v54  ;;  %vm471_vm4 = vcmp.ge.f32.partialorder %v404_v55, 0.0  ;;  %v503_v60 = vmul.f32 0.1, %v404_v55 }
  0xdc   : > { %v582_v61 = vpack.c.bf16 %v550_v59, %v550_v59  ;;  %v848_v62 = vsel %vm784_vm2, %v739_v52, %v816_v57  ;;  %vm769_vm5 = vcmp.ge.f32.partialorder %v702_v58, 0.0  ;;  %v801_v63 = vmul.f32 0.1, %v702_v58 }
  0xdd   : > { %v880_v0 = vpack.c.bf16 %v848_v62, %v848_v62  ;;  %v535_v1 = vsel %vm471_vm4, %v404_v55, %v503_v60 }
  0xde   : > { %1122 = vst.msk [vmem:[%s1374_s15 + $0xb4] sm:$0xf] %vm591_vm3, %v582_v61  ;;  %v567_v2 = vpack.c.bf16 %v535_v1, %v535_v1  ;;  %v833_v3 = vsel %vm769_vm5, %v702_v58, %v801_v63  ;;  %v443_v4 = vpop.f32.mrf.mxu2 }
  0xdf   : > { %1194 = vst.msk [vmem:[%s1374_s15 + $0xbc] sm:$0xf] %vm591_vm3, %v880_v0  ;;  %v865_v5 = vpack.c.bf16 %v833_v3, %v833_v3  ;;  %v444_v6 = vadd.f32 %v1367_v24, %v443_v4  ;;  %v741_v7 = vpop.f32.mrf.mxu3 }
  0xe0   : > { %1107 = vst.msk [vmem:[%s1374_s15 + $0x40] sm:$0xf] %vm591_vm3, %v567_v2  ;;  %v742_v8 = vadd.f32 %v1367_v24, %v741_v7  ;;  %v405_v9 = vpop.f32.mrf.mxu0 }
  0xe1   : > { %1179 = vst.msk [vmem:[%s1374_s15 + $0x48] sm:$0xf] %vm591_vm3, %v865_v5  ;;  %vm487_vm6 = vcmp.ge.f32.partialorder %v444_v6, 0.0  ;;  %v519_v10 = vmul.f32 0.1, %v444_v6  ;;  %v406_v11 = vadd.f32 %v1367_v24, %v405_v9  ;;  %v703_v12 = vpop.f32.mrf.mxu1 }
  0xe2   : > { %vm785_vm7 = vcmp.ge.f32.partialorder %v742_v8, 0.0  ;;  %v817_v13 = vmul.f32 0.1, %v742_v8  ;;  %v704_v14 = vadd.f32 %v1367_v24, %v703_v12 }
  0xe3   : > { %v551_v15 = vsel %vm487_vm6, %v444_v6, %v519_v10  ;;  %vm472_vm8 = vcmp.ge.f32.partialorder %v406_v11, 0.0  ;;  %v504_v16 = vmul.f32 0.1, %v406_v11 }
  0xe4   : > { %v583_v17 = vpack.c.bf16 %v551_v15, %v551_v15  ;;  %v849_v18 = vsel %vm785_vm7, %v742_v8, %v817_v13  ;;  %vm770_vm9 = vcmp.ge.f32.partialorder %v704_v14, 0.0  ;;  %v802_v19 = vmul.f32 0.1, %v704_v14 }
  0xe5   : > { %v881_v20 = vpack.c.bf16 %v849_v18, %v849_v18  ;;  %v536_v21 = vsel %vm472_vm8, %v406_v11, %v504_v16 }
  0xe6   : > { %1123 = vst.msk [vmem:[%s1374_s15 + $0xc0] sm:$0xf] %vm591_vm3, %v583_v17  ;;  %v568_v22 = vpack.c.bf16 %v536_v21, %v536_v21  ;;  %v834_v23 = vsel %vm770_vm9, %v704_v14, %v802_v19  ;;  %v445_v25 = vpop.f32.mrf.mxu2 }
  0xe7   : > { %1195 = vst.msk [vmem:[%s1374_s15 + $0xc8] sm:$0xf] %vm591_vm3, %v881_v20  ;;  %v866_v26 = vpack.c.bf16 %v834_v23, %v834_v23  ;;  %v446_v27 = vadd.f32 %v1367_v24, %v445_v25  ;;  %v743_v28 = vpop.f32.mrf.mxu3 }
  0xe8   : > { %1108 = vst.msk [vmem:[%s1374_s15 + $0x44] sm:$0xf] %vm591_vm3, %v568_v22  ;;  %v744_v29 = vadd.f32 %v1367_v24, %v743_v28  ;;  %v408_v30 = vpop.f32.mrf.mxu0 }
  0xe9   : > { %1180 = vst.msk [vmem:[%s1374_s15 + $0x4c] sm:$0xf] %vm591_vm3, %v866_v26  ;;  %vm488_vm10 = vcmp.ge.f32.partialorder %v446_v27, 0.0  ;;  %v520_v31 = vmul.f32 0.1, %v446_v27  ;;  %v409_v32 = vadd.f32 %v1367_v24, %v408_v30  ;;  %v706_v33 = vpop.f32.mrf.mxu1 }
  0xea   : > { %vm786_vm11 = vcmp.ge.f32.partialorder %v744_v29, 0.0  ;;  %v818_v34 = vmul.f32 0.1, %v744_v29  ;;  %v707_v35 = vadd.f32 %v1367_v24, %v706_v33 }
  0xeb   : > { %v552_v36 = vsel %vm488_vm10, %v446_v27, %v520_v31  ;;  %vm473_vm12 = vcmp.ge.f32.partialorder %v409_v32, 0.0  ;;  %v505_v37 = vmul.f32 0.1, %v409_v32 }
  0xec   : > { %v584_v38 = vpack.c.bf16 %v552_v36, %v552_v36  ;;  %v850_v39 = vsel %vm786_vm11, %v744_v29, %v818_v34  ;;  %vm771_vm13 = vcmp.ge.f32.partialorder %v707_v35, 0.0  ;;  %v803_v40 = vmul.f32 0.1, %v707_v35 }
  0xed   : > { %v882_v41 = vpack.c.bf16 %v850_v39, %v850_v39  ;;  %v537_v42 = vsel %vm473_vm12, %v409_v32, %v505_v37 }
  0xee   : > { %1124 = vst.msk [vmem:[%s1374_s15 + $0xc4] sm:$0xf] %vm591_vm3, %v584_v38  ;;  %v569_v43 = vpack.c.bf16 %v537_v42, %v537_v42  ;;  %v835_v44 = vsel %vm771_vm13, %v707_v35, %v803_v40  ;;  %v448_v45 = vpop.f32.mrf.mxu2 }
  0xef   : > { %1196 = vst.msk [vmem:[%s1374_s15 + $0xcc] sm:$0xf] %vm591_vm3, %v882_v41  ;;  %v867_v46 = vpack.c.bf16 %v835_v44, %v835_v44  ;;  %v449_v47 = vadd.f32 %v1367_v24, %v448_v45  ;;  %v746_v48 = vpop.f32.mrf.mxu3 }
  0xf0   : > { %1109 = vst.msk [vmem:[%s1374_s15 + $0x50] sm:$0xf] %vm591_vm3, %v569_v43  ;;  %v747_v49 = vadd.f32 %v1367_v24, %v746_v48  ;;  %v410_v50 = vpop.f32.mrf.mxu0 }
  0xf1   : > { %1181 = vst.msk [vmem:[%s1374_s15 + $0x58] sm:$0xf] %vm591_vm3, %v867_v46  ;;  %vm489_vm14 = vcmp.ge.f32.partialorder %v449_v47, 0.0  ;;  %v521_v51 = vmul.f32 0.1, %v449_v47  ;;  %v411_v52 = vadd.f32 %v1367_v24, %v410_v50  ;;  %v708_v53 = vpop.f32.mrf.mxu1 }
  0xf2   : > { %vm787_vm15 = vcmp.ge.f32.partialorder %v747_v49, 0.0  ;;  %v819_v54 = vmul.f32 0.1, %v747_v49  ;;  %v709_v55 = vadd.f32 %v1367_v24, %v708_v53 }
  0xf3   : > { %v553_v56 = vsel %vm489_vm14, %v449_v47, %v521_v51  ;;  %vm474_vm0 = vcmp.ge.f32.partialorder %v411_v52, 0.0  ;;  %v506_v57 = vmul.f32 0.1, %v411_v52 }
  0xf4   : > { %v585_v58 = vpack.c.bf16 %v553_v56, %v553_v56  ;;  %v851_v59 = vsel %vm787_vm15, %v747_v49, %v819_v54  ;;  %vm772_vm1 = vcmp.ge.f32.partialorder %v709_v55, 0.0  ;;  %v804_v60 = vmul.f32 0.1, %v709_v55 }
  0xf5   : > { %v883_v61 = vpack.c.bf16 %v851_v59, %v851_v59  ;;  %v538_v62 = vsel %vm474_vm0, %v411_v52, %v506_v57 }
  0xf6   : > { %1125 = vst.msk [vmem:[%s1374_s15 + $0xd0] sm:$0xf] %vm591_vm3, %v585_v58  ;;  %v570_v63 = vpack.c.bf16 %v538_v62, %v538_v62  ;;  %v836_v0 = vsel %vm772_vm1, %v709_v55, %v804_v60  ;;  %v450_v1 = vpop.f32.mrf.mxu2 }
  0xf7   : > { %1197 = vst.msk [vmem:[%s1374_s15 + $0xd8] sm:$0xf] %vm591_vm3, %v883_v61  ;;  %v868_v2 = vpack.c.bf16 %v836_v0, %v836_v0  ;;  %v451_v3 = vadd.f32 %v1367_v24, %v450_v1  ;;  %v748_v4 = vpop.f32.mrf.mxu3 }
  0xf8   : > { %1110 = vst.msk [vmem:[%s1374_s15 + $0x54] sm:$0xf] %vm591_vm3, %v570_v63  ;;  %v749_v5 = vadd.f32 %v1367_v24, %v748_v4  ;;  %v413_v6 = vpop.f32.mrf.mxu0 }
  0xf9   : > { %1182 = vst.msk [vmem:[%s1374_s15 + $0x5c] sm:$0xf] %vm591_vm3, %v868_v2  ;;  %vm490_vm2 = vcmp.ge.f32.partialorder %v451_v3, 0.0  ;;  %v522_v7 = vmul.f32 0.1, %v451_v3  ;;  %v414_v8 = vadd.f32 %v1367_v24, %v413_v6  ;;  %v711_v9 = vpop.f32.mrf.mxu1 }
  0xfa   : > { %vm788_vm4 = vcmp.ge.f32.partialorder %v749_v5, 0.0  ;;  %v820_v10 = vmul.f32 0.1, %v749_v5  ;;  %v712_v11 = vadd.f32 %v1367_v24, %v711_v9 }
  0xfb   : > { %v554_v12 = vsel %vm490_vm2, %v451_v3, %v522_v7  ;;  %vm475_vm5 = vcmp.ge.f32.partialorder %v414_v8, 0.0  ;;  %v507_v13 = vmul.f32 0.1, %v414_v8 }
  0xfc   : > { %v586_v14 = vpack.c.bf16 %v554_v12, %v554_v12  ;;  %v852_v15 = vsel %vm788_vm4, %v749_v5, %v820_v10  ;;  %vm773_vm6 = vcmp.ge.f32.partialorder %v712_v11, 0.0  ;;  %v805_v16 = vmul.f32 0.1, %v712_v11 }
  0xfd   : > { %v884_v17 = vpack.c.bf16 %v852_v15, %v852_v15  ;;  %v539_v18 = vsel %vm475_vm5, %v414_v8, %v507_v13 }
  0xfe   : > { %1126 = vst.msk [vmem:[%s1374_s15 + $0xd4] sm:$0xf] %vm591_vm3, %v586_v14  ;;  %v571_v19 = vpack.c.bf16 %v539_v18, %v539_v18  ;;  %v837_v20 = vsel %vm773_vm6, %v712_v11, %v805_v16  ;;  %v453_v21 = vpop.f32.mrf.mxu2 }
  0xff   : > { %1198 = vst.msk [vmem:[%s1374_s15 + $0xdc] sm:$0xf] %vm591_vm3, %v884_v17  ;;  %v869_v22 = vpack.c.bf16 %v837_v20, %v837_v20  ;;  %v454_v23 = vadd.f32 %v1367_v24, %v453_v21  ;;  %v751_v25 = vpop.f32.mrf.mxu3 }
 0x100   : > { %1111 = vst.msk [vmem:[%s1374_s15 + $0x60] sm:$0xf] %vm591_vm3, %v571_v19  ;;  %v752_v26 = vadd.f32 %v1367_v24, %v751_v25  ;;  %v415_v27 = vpop.f32.mrf.mxu0 }
 0x101   : > { %1183 = vst.msk [vmem:[%s1374_s15 + $0x68] sm:$0xf] %vm591_vm3, %v869_v22  ;;  %vm491_vm7 = vcmp.ge.f32.partialorder %v454_v23, 0.0  ;;  %v523_v28 = vmul.f32 0.1, %v454_v23  ;;  %v416_v29 = vadd.f32 %v1367_v24, %v415_v27  ;;  %v713_v30 = vpop.f32.mrf.mxu1 }
 0x102   : > { %vm789_vm8 = vcmp.ge.f32.partialorder %v752_v26, 0.0  ;;  %v821_v31 = vmul.f32 0.1, %v752_v26  ;;  %v714_v32 = vadd.f32 %v1367_v24, %v713_v30 }
 0x103   : > { %v555_v33 = vsel %vm491_vm7, %v454_v23, %v523_v28  ;;  %vm476_vm9 = vcmp.ge.f32.partialorder %v416_v29, 0.0  ;;  %v508_v34 = vmul.f32 0.1, %v416_v29 }
 0x104   : > { %v587_v35 = vpack.c.bf16 %v555_v33, %v555_v33  ;;  %v853_v36 = vsel %vm789_vm8, %v752_v26, %v821_v31  ;;  %vm774_vm10 = vcmp.ge.f32.partialorder %v714_v32, 0.0  ;;  %v806_v37 = vmul.f32 0.1, %v714_v32 }
 0x105   : > { %v885_v38 = vpack.c.bf16 %v853_v36, %v853_v36  ;;  %v540_v39 = vsel %vm476_vm9, %v416_v29, %v508_v34 }
 0x106   : > { %1127 = vst.msk [vmem:[%s1374_s15 + $0xe0] sm:$0xf] %vm591_vm3, %v587_v35  ;;  %v572_v40 = vpack.c.bf16 %v540_v39, %v540_v39  ;;  %v838_v41 = vsel %vm774_vm10, %v714_v32, %v806_v37  ;;  %v455_v42 = vpop.f32.mrf.mxu2 }
 0x107   : > { %1199 = vst.msk [vmem:[%s1374_s15 + $0xe8] sm:$0xf] %vm591_vm3, %v885_v38  ;;  %v870_v43 = vpack.c.bf16 %v838_v41, %v838_v41  ;;  %v456_v44 = vadd.f32 %v1367_v24, %v455_v42  ;;  %v753_v45 = vpop.f32.mrf.mxu3 }
 0x108   : > { %1112 = vst.msk [vmem:[%s1374_s15 + $0x64] sm:$0xf] %vm591_vm3, %v572_v40  ;;  %v754_v46 = vadd.f32 %v1367_v24, %v753_v45  ;;  %v418_v47 = vpop.f32.mrf.mxu0 }
 0x109   : > { %1184 = vst.msk [vmem:[%s1374_s15 + $0x6c] sm:$0xf] %vm591_vm3, %v870_v43  ;;  %vm492_vm11 = vcmp.ge.f32.partialorder %v456_v44, 0.0  ;;  %v524_v48 = vmul.f32 0.1, %v456_v44  ;;  %v419_v49 = vadd.f32 %v1367_v24, %v418_v47  ;;  %v716_v50 = vpop.f32.mrf.mxu1 }
 0x10a   : > { %vm790_vm12 = vcmp.ge.f32.partialorder %v754_v46, 0.0  ;;  %v822_v51 = vmul.f32 0.1, %v754_v46  ;;  %v717_v52 = vadd.f32 %v1367_v24, %v716_v50 }
 0x10b   : > { %v556_v53 = vsel %vm492_vm11, %v456_v44, %v524_v48  ;;  %vm477_vm13 = vcmp.ge.f32.partialorder %v419_v49, 0.0  ;;  %v509_v54 = vmul.f32 0.1, %v419_v49 }
 0x10c   : > { %v588_v55 = vpack.c.bf16 %v556_v53, %v556_v53  ;;  %v854_v56 = vsel %vm790_vm12, %v754_v46, %v822_v51  ;;  %vm775_vm14 = vcmp.ge.f32.partialorder %v717_v52, 0.0  ;;  %v807_v57 = vmul.f32 0.1, %v717_v52 }
 0x10d   : > { %v886_v58 = vpack.c.bf16 %v854_v56, %v854_v56  ;;  %v541_v59 = vsel %vm477_vm13, %v419_v49, %v509_v54 }
 0x10e   : > { %1128 = vst.msk [vmem:[%s1374_s15 + $0xe4] sm:$0xf] %vm591_vm3, %v588_v55  ;;  %v573_v60 = vpack.c.bf16 %v541_v59, %v541_v59  ;;  %v839_v61 = vsel %vm775_vm14, %v717_v52, %v807_v57  ;;  %v458_v62 = vpop.f32.mrf.mxu2 }
 0x10f   : > { %1200 = vst.msk [vmem:[%s1374_s15 + $0xec] sm:$0xf] %vm591_vm3, %v886_v58  ;;  %v871_v63 = vpack.c.bf16 %v839_v61, %v839_v61  ;;  %v459_v0 = vadd.f32 %v1367_v24, %v458_v62  ;;  %v756_v1 = vpop.f32.mrf.mxu3 }
 0x110   : > { %1113 = vst.msk [vmem:[%s1374_s15 + $0x70] sm:$0xf] %vm591_vm3, %v573_v60  ;;  %v757_v2 = vadd.f32 %v1367_v24, %v756_v1  ;;  %v420_v3 = vpop.f32.mrf.mxu0 }
 0x111   : > { %1185 = vst.msk [vmem:[%s1374_s15 + $0x78] sm:$0xf] %vm591_vm3, %v871_v63  ;;  %vm493_vm15 = vcmp.ge.f32.partialorder %v459_v0, 0.0  ;;  %v525_v4 = vmul.f32 0.1, %v459_v0  ;;  %v421_v5 = vadd.f32 %v1367_v24, %v420_v3  ;;  %v718_v6 = vpop.f32.mrf.mxu1 }
 0x112   : > { %vm791_vm0 = vcmp.ge.f32.partialorder %v757_v2, 0.0  ;;  %v823_v7 = vmul.f32 0.1, %v757_v2  ;;  %v719_v8 = vadd.f32 %v1367_v24, %v718_v6 }
 0x113   : > { %v557_v9 = vsel %vm493_vm15, %v459_v0, %v525_v4  ;;  %vm478_vm1 = vcmp.ge.f32.partialorder %v421_v5, 0.0  ;;  %v510_v10 = vmul.f32 0.1, %v421_v5 }
 0x114   : > { %v589_v11 = vpack.c.bf16 %v557_v9, %v557_v9  ;;  %v855_v12 = vsel %vm791_vm0, %v757_v2, %v823_v7  ;;  %vm776_vm2 = vcmp.ge.f32.partialorder %v719_v8, 0.0  ;;  %v808_v13 = vmul.f32 0.1, %v719_v8 }
 0x115   : > { %v887_v14 = vpack.c.bf16 %v855_v12, %v855_v12  ;;  %v542_v15 = vsel %vm478_vm1, %v421_v5, %v510_v10 }
 0x116   : > { %1129 = vst.msk [vmem:[%s1374_s15 + $0xf0] sm:$0xf] %vm591_vm3, %v589_v11  ;;  %v574_v16 = vpack.c.bf16 %v542_v15, %v542_v15  ;;  %v840_v17 = vsel %vm776_vm2, %v719_v8, %v808_v13  ;;  %v460_v18 = vpop.f32.mrf.mxu2 }
 0x117   : > { %1201 = vst.msk [vmem:[%s1374_s15 + $0xf8] sm:$0xf] %vm591_vm3, %v887_v14  ;;  %v872_v19 = vpack.c.bf16 %v840_v17, %v840_v17  ;;  %v461_v20 = vadd.f32 %v1367_v24, %v460_v18  ;;  %v758_v21 = vpop.f32.mrf.mxu3 }
 0x118   : > { %1114 = vst.msk [vmem:[%s1374_s15 + $0x74] sm:$0xf] %vm591_vm3, %v574_v16  ;;  %v759_v22 = vadd.f32 %v1367_v24, %v758_v21 }
 0x119   : > { %1186 = vst.msk [vmem:[%s1374_s15 + $0x7c] sm:$0xf] %vm591_vm3, %v872_v19  ;;  %vm494_vm4 = vcmp.ge.f32.partialorder %v461_v20, 0.0  ;;  %v526_v23 = vmul.f32 0.1, %v461_v20 }
 0x11a   : > { %vm792_vm5 = vcmp.ge.f32.partialorder %v759_v22, 0.0  ;;  %v824_v25 = vmul.f32 0.1, %v759_v22 }
 0x11b   : > { %v558_v26 = vsel %vm494_vm4, %v461_v20, %v526_v23 }
 0x11c   : > { %v590_v27 = vpack.c.bf16 %v558_v26, %v558_v26  ;;  %v856_v28 = vsel %vm792_vm5, %v759_v22, %v824_v25 }
 0x11d   : > { %v888_v29 = vpack.c.bf16 %v856_v28, %v856_v28 }
 0x11e   : > { %1130 = vst.msk [vmem:[%s1374_s15 + $0xf4] sm:$0xf] %vm591_vm3, %v590_v27 }
 0x11f   : > { %1202 = vst.msk [vmem:[%s1374_s15 + $0xfc] sm:$0xf] %vm591_vm3, %v888_v29 }
 0x120 PF: > { %s13_s12 = sadd.s32 1, %s1253_s12  }
 0x121   : > { %p10_p5 = scmp.ge.s32.totalorder %s13_s12, 4  }
 0x123   :  { %12 = sbr.rel (!%p10_p5) target bundleno = 1 (0x1), region = 94 }

</bundles_post_ra>
